<compile_context>
chip_gen: v7x
topology: tpu7x:2x2x1
jax: 0.10.0
libtpu: 0.0.40
codegen_flags: <defaults>
</compile_context>

<pallas_src>
import functools

import jax
import jax.numpy as jnp
from jax import lax
from jax.experimental import pallas as pl
from jax.experimental.pallas import tpu as pltpu


_VMEM_SPEC = pl.BlockSpec(memory_space=pltpu.MemorySpace.VMEM)


def _round_up(v, m):
    return ((v + m - 1) // m) * m


# -----------------------------------------------------------------------------
# Kernel 1: conv0 (folded matmul) + bias + param-free BatchNorm (group stats)
# -----------------------------------------------------------------------------
def _conv0_bn_kernel(p_ref, w_ref, b_ref, g_ref, o_ref, *, eps):
    """p: (N0, Kpad) folded 5x5 patches; w: (Kpad, P); b: (1, P);
    g: (P, P) group-averaging matrix (1/(N0*r^2) inside each pixel-shuffle group);
    o: (N0, P) normalized conv0 output (pre-PixelShuffle layout)."""
    y = jnp.dot(p_ref[...], w_ref[...], preferred_element_type=jnp.float32) + b_ref[...]
    # single-pass batch statistics (training-mode BatchNorm2d, affine=False, biased variance)
    s = jnp.sum(y, axis=0, keepdims=True)           # (1, P)
    ss = jnp.sum(y * y, axis=0, keepdims=True)      # (1, P)
    mean = jnp.dot(s, g_ref[...], preferred_element_type=jnp.float32)
    mean_sq = jnp.dot(ss, g_ref[...], preferred_element_type=jnp.float32)
    var = mean_sq - mean * mean
    o_ref[...] = (y - mean) * lax.rsqrt(var + eps)


# -----------------------------------------------------------------------------
# Kernel 2: fused SPADE block (one batch element per grid step)
# -----------------------------------------------------------------------------
def _spade_kernel(norm_ref, segp_ref, mask_ref, ws_ref, bs_ref, wd_ref, bd_ref,
                  wgb_ref, bgb_ref, wf_ref, bf_ref, o_ref,
                  *, w_img, c_out, dilations):
    """norm_ref: (N, Cout) normalized+shuffled conv0 output, N = H*W
    segp_ref:  (N, 9*nom) folded 3x3 im2col of the resized segmap
    mask_ref:  (n_dil, 9, N, 1) zero-padding masks per (dilation, tap)
    ws/bs:     mlp_shared folded weight/bias; wd/bd: conv2..5 folded (per dilation)
    wgb/bgb:   [mlp_gamma | mlp_beta] folded; wf/bf: final_conv folded
    o_ref:     (N, Cout)"""

    def shift_rows(x, s):
        # result[r] = x[(r + s) % N]; out-of-image source rows are zeroed by the mask.
        n = x.shape[0]
        s = s % n
        if s == 0:
            return x
        return jnp.concatenate([x[s:, :], x[:s, :]], axis=0)

    def conv3x3(x, w_fold, bias, dil, mask_idx):
        # "same" 3x3 conv, dilation `dil`: taps folded onto the lane axis -> ONE matmul.
        taps = []
        t = 0
        for ki in range(3):
            for kj in range(3):
                off = ((ki - 1) * dil) * w_img + (kj - 1) * dil
                shifted = shift_rows(x, off)
                taps.append(shifted * mask_ref[mask_idx, t])
                t += 1
        patches = jnp.concatenate(taps, axis=1)          # (N, 9*Cin), lane-dense
        return jnp.dot(patches, w_fold, preferred_element_type=jnp.float32) + bias

    # mlp_shared (im2col folded in the wrapper) + ReLU
    actv = jnp.maximum(
        jnp.dot(segp_ref[...], ws_ref[...], preferred_element_type=jnp.float32) + bs_ref[...],
        0.0)

    # conv2..conv5 (dilations 1..4) -> channel concat
    feats = [conv3x3(actv, wd_ref[d], bd_ref[d], dilations[d], d)
             for d in range(len(dilations))]
    actv_cat = jnp.concatenate(feats, axis=1)

    # mlp_gamma / mlp_beta share their input -> one fused matmul
    gb = conv3x3(actv_cat, wgb_ref[...], bgb_ref[...], 1, 0)
    gamma = gb[:, :c_out]
    beta = gb[:, c_out:]

    modulated = norm_ref[...] * (1.0 + gamma) + beta

    # final_conv + ReLU (SPADE's ReLU and UpConvLayer's outer ReLU coincide)
    out = conv3x3(modulated, wf_ref[...], bf_ref[...], 1, 0)
    o_ref[...] = jnp.maximum(out, 0.0)


# -----------------------------------------------------------------------------
# Wrapper-side layout plumbing
# -----------------------------------------------------------------------------
def _im2col_folded(x_nhwc, ksize, pad):
    """'same'/stride-1 im2col with taps folded onto the lane axis -> (B, H*W, K*K*C).
    Tap order is row-major (ki, kj) with channels fastest, matching w.reshape(K*K*C, Cout)."""
    b, h, w, c = x_nhwc.shape
    xp = jnp.pad(x_nhwc, ((0, 0), (pad, pad), (pad, pad), (0, 0)))
    cols = []
    for i in range(ksize):
        for j in range(ksize):
            win = lax.slice(xp, (0, i, j, 0), (b, i + h, j + w, c))
            cols.append(win.reshape(b, h * w, c))
    return jnp.concatenate(cols, axis=-1)


def _interp_nearest(x_nhwc, out_h, out_w):
    """F.interpolate(mode='nearest'): src = floor(dst * in / out)."""
    b, h, w, c = x_nhwc.shape
    rows = (jnp.arange(out_h) * h) // out_h
    cols = (jnp.arange(out_w) * w) // out_w
    return x_nhwc[:, rows][:, :, cols]


def _build_tap_masks(h, w, dilations):
    """(n_dil, 9, h*w, 1) float masks: 1 where the dilated 3x3 tap stays inside the image."""
    hh, ww = jnp.meshgrid(jnp.arange(h), jnp.arange(w), indexing="ij")
    hh = hh.reshape(h * w, 1)
    ww = ww.reshape(h * w, 1)
    per_dil = []
    for d in dilations:
        per_tap = []
        for ki in range(3):
            for kj in range(3):
                oh, ow = (ki - 1) * d, (kj - 1) * d
                valid = ((hh + oh >= 0) & (hh + oh < h) &
                         (ww + ow >= 0) & (ww + ow < w))
                per_tap.append(valid.astype(jnp.float32))
        per_dil.append(jnp.stack(per_tap, axis=0))
    return jnp.stack(per_dil, axis=0)


# -----------------------------------------------------------------------------
# Module forward
# -----------------------------------------------------------------------------
def up_conv_layer(x_nhwc, x_org_nhwc, params, *, scale=2):
    b, h, w, cin = x_nhwc.shape
    planes = params["conv0_w"].shape[-1]
    c_out = planes // (scale * scale)
    nhidden = params["ws_w"].shape[-1]
    nom = params["ws_w"].shape[2]
    dilations = (1, 2, 3, 4)
    h_up, w_up = h * scale, w * scale
    n0 = b * h * w
    n_b = h_up * w_up

    # ---- conv0 (5x5, pad 2, bias) + param-free BatchNorm -------------------------------------
    k0 = 25 * cin
    k0p = _round_up(k0, 128)                      # pad the contraction to the MXU-native 128
    p0 = _im2col_folded(x_nhwc, 5, 2).reshape(n0, k0)
    p0 = jnp.pad(p0, ((0, 0), (0, k0p - k0)))
    w0 = jnp.pad(params["conv0_w"].reshape(k0, planes), ((0, k0p - k0), (0, 0)))
    # BN of the shuffled output == group stats over r^2 consecutive conv0 channels.
    gmat = (jnp.kron(jnp.eye(c_out, dtype=jnp.float32),
                     jnp.ones((scale * scale, scale * scale), jnp.float32))
            / float(n0 * scale * scale))

    norm0 = pl.pallas_call(
        functools.partial(_conv0_bn_kernel, eps=1e-5),
        out_shape=jax.ShapeDtypeStruct((n0, planes), jnp.float32),
        in_specs=[_VMEM_SPEC] * 4,
        out_specs=_VMEM_SPEC,
    )(p0, w0, params["conv0_b"].reshape(1, planes), gmat)

    # ---- PixelShuffle (pure layout plumbing) --------------------------------------------------
    norm_sh = (norm0.reshape(b, h, w, c_out, scale, scale)
                     .transpose(0, 1, 4, 2, 5, 3)
                     .reshape(b, n_b, c_out))

    # ---- segmap: nearest resize + folded 3x3 im2col (kernel inputs -> wrapper-side) -----------
    seg = _interp_nearest(x_org_nhwc, h_up, w_up)
    segp = _im2col_folded(seg, 3, 1)                        # (B, n_b, 9*nom)
    kseg = segp.shape[-1]
    tap_masks = _build_tap_masks(h_up, w_up, dilations)     # (4, 9, n_b, 1)

    # ---- fold / fuse the SPADE weights --------------------------------------------------------
    w_shared = params["ws_w"].reshape(9 * nom, nhidden)
    b_shared = params["ws_b"].reshape(1, nhidden)
    w_dil = jnp.stack([params[f"conv{i}_w"].reshape(9 * nhidden, nhidden // 4)
                       for i in (2, 3, 4, 5)], axis=0)       # (4, 9*Ch, Ch/4)
    b_dil = jnp.stack([params[f"conv{i}_b"].reshape(1, nhidden // 4)
                       for i in (2, 3, 4, 5)], axis=0)       # (4, 1, Ch/4)
    w_gb = jnp.concatenate([params["gamma_w"], params["beta_w"]],
                           axis=-1).reshape(9 * nhidden, 2 * c_out)
    b_gb = jnp.concatenate([params["gamma_b"], params["beta_b"]]).reshape(1, 2 * c_out)
    w_fin = params["final_w"].reshape(9 * c_out, c_out)
    b_fin = params["final_b"].reshape(1, c_out)

    out = pl.pallas_call(
        functools.partial(_spade_kernel, w_img=w_up, c_out=c_out, dilations=dilations),
        out_shape=jax.ShapeDtypeStruct((b, n_b, c_out), jnp.float32),
        grid=(b,),
        in_specs=[
            pl.BlockSpec((None, n_b, c_out), lambda i: (i, 0, 0)),             # normalized
            pl.BlockSpec((None, n_b, kseg), lambda i: (i, 0, 0)),              # seg patches
            pl.BlockSpec((len(dilations), 9, n_b, 1), lambda i: (0, 0, 0, 0)), # tap masks
            pl.BlockSpec((kseg, nhidden), lambda i: (0, 0)),                   # w_shared
            pl.BlockSpec((1, nhidden), lambda i: (0, 0)),                      # b_shared
            pl.BlockSpec((len(dilations), 9 * nhidden, nhidden // 4),
                         lambda i: (0, 0, 0)),                                 # w_dil
            pl.BlockSpec((len(dilations), 1, nhidden // 4), lambda i: (0, 0, 0)),  # b_dil
            pl.BlockSpec((9 * nhidden, 2 * c_out), lambda i: (0, 0)),          # w_gamma|beta
            pl.BlockSpec((1, 2 * c_out), lambda i: (0, 0)),                    # b_gamma|beta
            pl.BlockSpec((9 * c_out, c_out), lambda i: (0, 0)),                # w_final
            pl.BlockSpec((1, c_out), lambda i: (0, 0)),                        # b_final
        ],
        out_specs=pl.BlockSpec((None, n_b, c_out), lambda i: (i, 0, 0)),
        compiler_params=pltpu.CompilerParams(dimension_semantics=("parallel",)),
    )(norm_sh, segp, tap_masks, w_shared, b_shared, w_dil, b_dil, w_gb, b_gb, w_fin, b_fin)

    return out.reshape(b, h_up, w_up, c_out)


# -----------------------------------------------------------------------------
# Pure-JAX reference (for correctness check)
# -----------------------------------------------------------------------------
def reference(x_nhwc, x_org_nhwc, params, *, scale=2):
    dn = ("NHWC", "HWIO", "NHWC")

    def conv(v, wgt, bias, dil=1):
        return lax.conv_general_dilated(
            v, wgt, (1, 1), [(dil, dil), (dil, dil)],
            rhs_dilation=(dil, dil), dimension_numbers=dn) + bias

    planes = params["conv0_w"].shape[-1]
    c_out = planes // (scale * scale)

    y = lax.conv_general_dilated(x_nhwc, params["conv0_w"], (1, 1), [(2, 2), (2, 2)],
                                 dimension_numbers=dn) + params["conv0_b"]
    b, h, w, _ = y.shape
    y = (y.reshape(b, h, w, c_out, scale, scale)
          .transpose(0, 1, 4, 2, 5, 3)
          .reshape(b, h * scale, w * scale, c_out))                 # PixelShuffle

    mean = jnp.mean(y, axis=(0, 1, 2))
    var = jnp.mean((y - mean) ** 2, axis=(0, 1, 2))
    normalized = (y - mean) * lax.rsqrt(var + 1e-5)                 # BN (train, affine=False)

    seg = _interp_nearest(x_org_nhwc, h * scale, w * scale)
    actv = jnp.maximum(conv(seg, params["ws_w"], params["ws_b"]), 0.0)
    feats = [conv(actv, params[f"conv{i}_w"], params[f"conv{i}_b"], dil=i - 1)
             for i in (2, 3, 4, 5)]
    actv_cat = jnp.concatenate(feats, axis=-1)
    gamma = conv(actv_cat, params["gamma_w"], params["gamma_b"])
    beta = conv(actv_cat, params["beta_w"], params["beta_b"])
    out = normalized * (1.0 + gamma) + beta
    out = jnp.maximum(conv(out, params["final_w"], params["final_b"]), 0.0)
    return jnp.maximum(out, 0.0)                                     # outer ReLU of UpConvLayer


# -----------------------------------------------------------------------------
# Main
# -----------------------------------------------------------------------------
if __name__ == "__main__":
    B, CIN, H, W = 2, 4, 16, 16          # torch x: (B, in_channels, H, W) == [2, 4, 16, 16]
    C_OUT, SCALE, NHID, NOM = 8, 2, 32, 3
    PLANES = C_OUT * SCALE * SCALE       # conv0 output channels (out_channels * scale^2)

    key = jax.random.PRNGKey(0)
    keys = jax.random.split(key, 16)

    x = jax.random.normal(keys[0], (B, H, W, CIN), jnp.float32)        # NHWC view of torch x
    x_org = jax.random.normal(keys[1], (B, H, W, NOM), jnp.float32)    # segmap / original frame

    params = {
        "conv0_w": 0.1 * jax.random.normal(keys[2], (5, 5, CIN, PLANES), jnp.float32),
        "conv0_b": 0.1 * jax.random.normal(keys[3], (PLANES,), jnp.float32),
        "ws_w": 0.1 * jax.random.normal(keys[4], (3, 3, NOM, NHID), jnp.float32),
        "ws_b": 0.1 * jax.random.normal(keys[5], (NHID,), jnp.float32),
        "gamma_w": 0.05 * jax.random.normal(keys[6], (3, 3, NHID, C_OUT), jnp.float32),
        "gamma_b": 0.05 * jax.random.normal(keys[7], (C_OUT,), jnp.float32),
        "beta_w": 0.05 * jax.random.normal(keys[8], (3, 3, NHID, C_OUT), jnp.float32),
        "beta_b": 0.05 * jax.random.normal(keys[9], (C_OUT,), jnp.float32),
        "final_w": 0.1 * jax.random.normal(keys[10], (3, 3, C_OUT, C_OUT), jnp.float32),
        "final_b": 0.1 * jax.random.normal(keys[11], (C_OUT,), jnp.float32),
    }
    for idx, i in enumerate((2, 3, 4, 5)):
        params[f"conv{i}_w"] = 0.05 * jax.random.normal(
            keys[12 + idx], (3, 3, NHID, NHID // 4), jnp.float32)
        params[f"conv{i}_b"] = 0.05 * jax.random.normal(
            jax.random.fold_in(keys[12 + idx], 1), (NHID // 4,), jnp.float32)

    out = up_conv_layer(x, x_org, params, scale=SCALE)
    jax.block_until_ready(out)

    ref = reference(x, x_org, params, scale=SCALE)
    assert out.shape == (B, H * SCALE, W * SCALE, C_OUT)
    assert jnp.allclose(out, ref, atol=2e-3, rtol=2e-3), (
        f"mismatch vs reference, max abs diff {jnp.max(jnp.abs(out - ref)):.3e}")

    print("KERNEL_OK")
</pallas_src>

<mosaic_0001>
module attributes {stable_mosaic.version = 11 : i64} {
  func.func @_conv0_bn_kernel(%arg0: memref<512x128xf32, #tpu.memory_space<vmem>>, %arg1: memref<128x32xf32, #tpu.memory_space<vmem>>, %arg2: memref<1x32xf32, #tpu.memory_space<vmem>>, %arg3: memref<32x32xf32, #tpu.memory_space<vmem>>, %arg4: memref<512x32xf32, #tpu.memory_space<vmem>>) attributes {dimension_semantics = [], scalar_prefetch = 0 : i64, scratch_operands = 0 : i64, tpu.core_type = #tpu.core_type<tc>} {
    %c0 = arith.constant 0 : index
    %c0_0 = arith.constant 0 : index
    %0 = vector.load %arg0[%c0, %c0_0] : memref<512x128xf32, #tpu.memory_space<vmem>>, vector<512x128xf32>
    %c0_1 = arith.constant 0 : index
    %c0_2 = arith.constant 0 : index
    %1 = vector.load %arg1[%c0_1, %c0_2] : memref<128x32xf32, #tpu.memory_space<vmem>>, vector<128x32xf32>
    %cst = arith.constant dense<0.000000e+00> : vector<512x32xf32>
    %2 = tpu.matmul %0, %1, %cst {dimension_numbers = #tpu.dot_dimension_numbers<[1], [0], [0], [1], [0, 0, 1, 1], [], []>} : vector<512x128xf32>, vector<128x32xf32>, vector<512x32xf32> -> vector<512x32xf32>
    %c0_3 = arith.constant 0 : index
    %c0_4 = arith.constant 0 : index
    %3 = vector.load %arg2[%c0_3, %c0_4] : memref<1x32xf32, #tpu.memory_space<vmem>>, vector<1x32xf32>
    %4 = vector.broadcast %3 : vector<1x32xf32> to vector<512x32xf32>
    %5 = arith.addf %2, %4 : vector<512x32xf32>
    %cst_5 = arith.constant dense<0.000000e+00> : vector<32xf32>
    %6 = vector.multi_reduction <add>, %5, %cst_5 [0] : vector<512x32xf32> to vector<32xf32>
    %7 = vector.shape_cast %6 : vector<32xf32> to vector<1x32xf32>
    %8 = arith.mulf %5, %5 : vector<512x32xf32>
    %cst_6 = arith.constant dense<0.000000e+00> : vector<32xf32>
    %9 = vector.multi_reduction <add>, %8, %cst_6 [0] : vector<512x32xf32> to vector<32xf32>
    %10 = vector.shape_cast %9 : vector<32xf32> to vector<1x32xf32>
    %c0_7 = arith.constant 0 : index
    %c0_8 = arith.constant 0 : index
    %11 = vector.load %arg3[%c0_7, %c0_8] : memref<32x32xf32, #tpu.memory_space<vmem>>, vector<32x32xf32>
    %cst_9 = arith.constant dense<0.000000e+00> : vector<1x32xf32>
    %12 = tpu.matmul %7, %11, %cst_9 {dimension_numbers = #tpu.dot_dimension_numbers<[1], [0], [0], [1], [0, 0, 1, 1], [], []>} : vector<1x32xf32>, vector<32x32xf32>, vector<1x32xf32> -> vector<1x32xf32>
    %c0_10 = arith.constant 0 : index
    %c0_11 = arith.constant 0 : index
    %13 = vector.load %arg3[%c0_10, %c0_11] : memref<32x32xf32, #tpu.memory_space<vmem>>, vector<32x32xf32>
    %cst_12 = arith.constant dense<0.000000e+00> : vector<1x32xf32>
    %14 = tpu.matmul %10, %13, %cst_12 {dimension_numbers = #tpu.dot_dimension_numbers<[1], [0], [0], [1], [0, 0, 1, 1], [], []>} : vector<1x32xf32>, vector<32x32xf32>, vector<1x32xf32> -> vector<1x32xf32>
    %15 = arith.mulf %12, %12 : vector<1x32xf32>
    %16 = arith.subf %14, %15 : vector<1x32xf32>
    %17 = vector.broadcast %12 : vector<1x32xf32> to vector<512x32xf32>
    %18 = arith.subf %5, %17 : vector<512x32xf32>
    %cst_13 = arith.constant 9.99999974E-6 : f32
    %19 = vector.broadcast %cst_13 : f32 to vector<1x32xf32>
    %20 = arith.addf %16, %19 : vector<1x32xf32>
    %21 = math.rsqrt %20 : vector<1x32xf32>
    %22 = vector.broadcast %21 : vector<1x32xf32> to vector<512x32xf32>
    %23 = arith.mulf %18, %22 : vector<512x32xf32>
    %c0_14 = arith.constant 0 : index
    %c0_15 = arith.constant 0 : index
    %24 = vector.load %arg4[%c0_14, %c0_15] : memref<512x32xf32, #tpu.memory_space<vmem>>, vector<512x32xf32>
    tpu.vector_store %arg4[%c0_14, %c0_15], %23 {strides = array<i32>} : memref<512x32xf32, #tpu.memory_space<vmem>>, vector<512x32xf32>,
    return
  }
}

</mosaic_0001>

<bundles_post_ra>
// kernel: tpu_custom_call.1
= control target key start
LH: loop header
LB: loop body
LE: loop exit
PB: predicated region body
PF: predicated region fallthrough
CT: control target
= control target key end

     0   :  { %9 = vsyncpa [#allocation3], 0  ;;  %s1528_s15 = smov [#allocation2]   ;;  %s2901_s0 = inlined_call_operand.hbm [shape: f32[512,128], index: 0, kind: input, shape index: {}]   ;;  %s2902_s1 = inlined_call_operand.vmem [shape: f32[128,32], index: 1, kind: input, shape index: {}]   ;;  %s2903_s2 = inlined_call_operand.vmem [shape: f32[1,32], index: 2, kind: input, shape index: {}]   ;;  %s2904_s3 = inlined_call_operand.vmem [shape: f32[32,32], index: 3, kind: input, shape index: {}]   ;;  %s2905_s4 = inlined_call_operand.vmem [shape: f32[512,32], index: 4, kind: output, shape index: {}]  }
   0x1   :  { %s15_s16 = sshll.u32 %s1528_s15, 4  ;;  %s1504_s19 = scalar_lea.hbm %s2901_s0, 8192  ;;  %s16_s16 = int_to_ptr.vmem [resolvable:$true] %s15_s16 }
   0x2   :  { %p1505_p0 = scmp.ne.s32.totalorder %s2901_s0, %s1504_s19  ;;  %p1508_p1 = scmp.lt.u32.totalorder %s1504_s19, %s2901_s0 }
   0x4   :  { %p1510_p2 = pnand %p1508_p1, %p1505_p0 }
   0x6   :  { %1513 = shalt.err (!%p1510_p2)
}
   0x7   :  { %s1514_s24 = scalar_lea.vmem %s16_s16, 8192  ;;  %p1519_p4 = scmp.lt.s32.totalorder %s16_s16, %s16_s16 }
   0x8   :  { %p1515_p3 = scmp.ne.s32.totalorder %s16_s16, %s1514_s24  ;;  %p1520_p5 = scmp.lt.s32.totalorder %s1514_s24, %s1514_s24 }
   0xa   :  { %p1521_p6 = por %p1520_p5, %p1519_p4 }
   0xc   :  { %p1522_p7 = pnand %p1521_p6, %p1515_p3 }
   0xe   :  { %1525 = shalt.err (!%p1522_p7)
}
   0xf   :  { %s1529_s25 = smov 128   ;;  %s1530_s26 = smov 8  }
  0x10   :  { %21 = dma.hbm_to_vmem [thread:$0]  %s2901_s0, 8192, %s16_s16, [#allocation3], %s1529_s25, %s1529_s25, %s1530_s26  }
  0x11   :  { %1526 = dma.done.wait [#allocation3], 8192  }
  0x12   :  { %1527 = vsyncadd [#allocation3], 4294959104  ;;  %v95_v0 = vld [vmem:[%s2902_s1] sm:$0xff]  ;;  %v96_v1 = vld [vmem:[%s2902_s1 + $0x8] sm:$0xff]  ;;  %vm503_vm0 = vcmask 261120   ;;  %vm1532_vm1 = vmmov 0  }
  0x13   :  { %v97_v2 = vld [vmem:[%s2902_s1 + $0x10] sm:$0xff]  ;;  %v1436_v3 = vpack.c.bf16 %v96_v1, %v95_v0  ;;  %v98_v4 = vld [vmem:[%s2902_s1 + $0x18] sm:$0xff]  ;;  %v99_v6 = vld [vmem:[%s2902_s1 + $0x20] sm:$0xff] }
  0x14   :  { %v1440_v5 = vpack.c.bf16 %v98_v4, %v97_v2  ;;  %v100_v7 = vld [vmem:[%s2902_s1 + $0x28] sm:$0xff]  ;;  %v31_v9 = vld [vmem:[#allocation2] sm:$0xff]  ;;  %v101_v10 = vld [vmem:[%s2902_s1 + $0x30] sm:$0xff] }
  0x15   :  { %1437 = vmatprep.subr.bf16.mxu0 %v1436_v3  ;;  %1480 = vmatprep.subr.bf16.mxu1 %v1436_v3  ;;  %v1444_v8 = vpack.c.bf16 %v100_v7, %v99_v6  ;;  %v102_v11 = vld [vmem:[%s2902_s1 + $0x38] sm:$0xff]  ;;  %v103_v13 = vld [vmem:[%s2902_s1 + $0x40] sm:$0xff]  ;;  %v104_v14 = vld [vmem:[%s2902_s1 + $0x48] sm:$0xff] }
  0x16   :  { %1439 = vmatpush3.bf16.msra.mxu0 %v1436_v3  ;;  %1488 = vmatpush3.bf16.msra.mxu1 %v1436_v3  ;;  %v1448_v12 = vpack.c.bf16 %v102_v11, %v101_v10  ;;  %v1452_v15 = vpack.c.bf16 %v104_v14, %v103_v13  ;;  %v105_v16 = vld [vmem:[%s2902_s1 + $0x50] sm:$0xff]  ;;  %v106_v17 = vld [vmem:[%s2902_s1 + $0x58] sm:$0xff]  ;;  %v67_v19 = vld [vmem:[#allocation2 + $0x120] sm:$0xff] }
  0x17   :  { %1441 = vmatprep.subr.bf16.mxu0 %v1440_v5  ;;  %1481 = vmatprep.subr.bf16.mxu1 %v1440_v5  ;;  %v1456_v18 = vpack.c.bf16 %v106_v17, %v105_v16  ;;  %v107_v20 = vld [vmem:[%s2902_s1 + $0x60] sm:$0xff]  ;;  %v108_v21 = vld [vmem:[%s2902_s1 + $0x68] sm:$0xff]  ;;  %v109_v23 = vld [vmem:[%s2902_s1 + $0x70] sm:$0xff] }
  0x18   :  { %1318 = vmatprep.mubr.f32.mxu0 %v31_v9  ;;  %1372 = vmatprep.mubr.f32.mxu1 %v67_v19  ;;  %v1460_v22 = vpack.c.bf16 %v108_v21, %v107_v20  ;;  %v110_v24 = vld [vmem:[%s2902_s1 + $0x78] sm:$0xff]  ;;  %v32_v26 = vld [vmem:[#allocation2 + $0x8] sm:$0xff]  ;;  %v33_v28 = vld [vmem:[#allocation2 + $0x10] sm:$0xff] }
  0x19   :  { %v1464_v25 = vpack.c.bf16 %v110_v24, %v109_v23  ;;  %v68_v27 = vld [vmem:[#allocation2 + $0x128] sm:$0xff]  ;;  %v69_v29 = vld [vmem:[#allocation2 + $0x130] sm:$0xff]  ;;  %v34_v30 = vld [vmem:[#allocation2 + $0x18] sm:$0xff] }
  0x1a   :  { %1443 = vmatpush3.bf16.msra.mxu0 %v1440_v5  ;;  %1489 = vmatpush3.bf16.msra.mxu1 %v1440_v5  ;;  %v70_v31 = vld [vmem:[#allocation2 + $0x138] sm:$0xff]  ;;  %v35_v32 = vld [vmem:[#allocation2 + $0x20] sm:$0xff]  ;;  %v36_v34 = vld [vmem:[#allocation2 + $0x28] sm:$0xff] }
  0x1b   :  { %1445 = vmatprep.subr.bf16.mxu0 %v1444_v8  ;;  %1482 = vmatprep.subr.bf16.mxu1 %v1444_v8  ;;  %v71_v33 = vld [vmem:[#allocation2 + $0x140] sm:$0xff]  ;;  %v72_v35 = vld [vmem:[#allocation2 + $0x148] sm:$0xff]  ;;  %v37_v36 = vld [vmem:[#allocation2 + $0x30] sm:$0xff] }
  0x1c   :  { %v73_v37 = vld [vmem:[#allocation2 + $0x150] sm:$0xff]  ;;  %v38_v38 = vld [vmem:[#allocation2 + $0x38] sm:$0xff]  ;;  %v39_v40 = vld [vmem:[#allocation2 + $0x40] sm:$0xff] }
  0x1d   :  { %v74_v39 = vld [vmem:[#allocation2 + $0x158] sm:$0xff]  ;;  %v75_v41 = vld [vmem:[#allocation2 + $0x160] sm:$0xff]  ;;  %v40_v42 = vld [vmem:[#allocation2 + $0x48] sm:$0xff] }
  0x1e   :  { %1447 = vmatpush3.bf16.msra.mxu0 %v1444_v8  ;;  %1490 = vmatpush3.bf16.msra.mxu1 %v1444_v8  ;;  %v76_v43 = vld [vmem:[#allocation2 + $0x168] sm:$0xff]  ;;  %v41_v44 = vld [vmem:[#allocation2 + $0x50] sm:$0xff]  ;;  %v42_v46 = vld [vmem:[#allocation2 + $0x58] sm:$0xff] }
  0x1f   :  { %1449 = vmatprep.subr.bf16.mxu0 %v1448_v12  ;;  %1483 = vmatprep.subr.bf16.mxu1 %v1448_v12  ;;  %v77_v45 = vld [vmem:[#allocation2 + $0x170] sm:$0xff]  ;;  %v78_v47 = vld [vmem:[#allocation2 + $0x178] sm:$0xff]  ;;  %v43_v48 = vld [vmem:[#allocation2 + $0x60] sm:$0xff] }
  0x20   :  { %v79_v49 = vld [vmem:[#allocation2 + $0x180] sm:$0xff]  ;;  %v44_v50 = vld [vmem:[#allocation2 + $0x68] sm:$0xff]  ;;  %v45_v52 = vld [vmem:[#allocation2 + $0x70] sm:$0xff] }
  0x21   :  { %v80_v51 = vld [vmem:[#allocation2 + $0x188] sm:$0xff]  ;;  %v81_v53 = vld [vmem:[#allocation2 + $0x190] sm:$0xff]  ;;  %v46_v54 = vld [vmem:[#allocation2 + $0x78] sm:$0xff] }
  0x22   :  { %1451 = vmatpush3.bf16.msra.mxu0 %v1448_v12  ;;  %1491 = vmatpush3.bf16.msra.mxu1 %v1448_v12  ;;  %v82_v55 = vld [vmem:[#allocation2 + $0x198] sm:$0xff]  ;;  %v47_v56 = vld [vmem:[#allocation2 + $0x80] sm:$0xff]  ;;  %v48_v58 = vld [vmem:[#allocation2 + $0x88] sm:$0xff] }
  0x23   :  { %1453 = vmatprep.subr.bf16.mxu0 %v1452_v15  ;;  %1484 = vmatprep.subr.bf16.mxu1 %v1452_v15  ;;  %v83_v57 = vld [vmem:[#allocation2 + $0x1a0] sm:$0xff]  ;;  %v84_v59 = vld [vmem:[#allocation2 + $0x1a8] sm:$0xff]  ;;  %v49_v60 = vld [vmem:[#allocation2 + $0x90] sm:$0xff] }
  0x24   :  { %v85_v61 = vld [vmem:[#allocation2 + $0x1b0] sm:$0xff]  ;;  %v50_v62 = vld [vmem:[#allocation2 + $0x98] sm:$0xff]  ;;  %v51_v0 = vld [vmem:[#allocation2 + $0xa0] sm:$0xff] }
  0x25   :  { %v86_v63 = vld [vmem:[#allocation2 + $0x1b8] sm:$0xff]  ;;  %v87_v1 = vld [vmem:[#allocation2 + $0x1c0] sm:$0xff]  ;;  %v52_v2 = vld [vmem:[#allocation2 + $0xa8] sm:$0xff] }
  0x26   :  { %1455 = vmatpush3.bf16.msra.mxu0 %v1452_v15  ;;  %1492 = vmatpush3.bf16.msra.mxu1 %v1452_v15  ;;  %v88_v3 = vld [vmem:[#allocation2 + $0x1c8] sm:$0xff]  ;;  %v53_v4 = vld [vmem:[#allocation2 + $0xb0] sm:$0xff]  ;;  %v54_v6 = vld [vmem:[#allocation2 + $0xb8] sm:$0xff] }
  0x27   :  { %1457 = vmatprep.subr.bf16.mxu0 %v1456_v18  ;;  %1485 = vmatprep.subr.bf16.mxu1 %v1456_v18  ;;  %v89_v5 = vld [vmem:[#allocation2 + $0x1d0] sm:$0xff]  ;;  %v90_v7 = vld [vmem:[#allocation2 + $0x1d8] sm:$0xff]  ;;  %v55_v8 = vld [vmem:[#allocation2 + $0xc0] sm:$0xff] }
  0x28   :  { %v91_v9 = vld [vmem:[#allocation2 + $0x1e0] sm:$0xff]  ;;  %v56_v10 = vld [vmem:[#allocation2 + $0xc8] sm:$0xff]  ;;  %v57_v12 = vld [vmem:[#allocation2 + $0xd0] sm:$0xff] }
  0x29   :  { %v92_v11 = vld [vmem:[#allocation2 + $0x1e8] sm:$0xff]  ;;  %v93_v13 = vld [vmem:[#allocation2 + $0x1f0] sm:$0xff]  ;;  %v58_v14 = vld [vmem:[#allocation2 + $0xd8] sm:$0xff] }
  0x2a   :  { %1459 = vmatpush3.bf16.msra.mxu0 %v1456_v18  ;;  %1493 = vmatpush3.bf16.msra.mxu1 %v1456_v18  ;;  %v94_v15 = vld [vmem:[#allocation2 + $0x1f8] sm:$0xff]  ;;  %v59_v16 = vld [vmem:[#allocation2 + $0xe0] sm:$0xff]  ;;  %v60_v17 = vld [vmem:[#allocation2 + $0xe8] sm:$0xff] }
  0x2b   :  { %1461 = vmatprep.subr.bf16.mxu0 %v1460_v22  ;;  %1486 = vmatprep.subr.bf16.mxu1 %v1460_v22  ;;  %v61_v18 = vld [vmem:[#allocation2 + $0xf0] sm:$0xff]  ;;  %v62_v19 = vld [vmem:[#allocation2 + $0xf8] sm:$0xff]  ;;  %v63_v20 = vld [vmem:[#allocation2 + $0x100] sm:$0xff] }
  0x2c   :  { %v64_v21 = vld [vmem:[#allocation2 + $0x108] sm:$0xff]  ;;  %v66_v23 = vld [vmem:[#allocation2 + $0x118] sm:$0xff]  ;;  %v834_v24 = vld [vmem:[%s2904_s3] sm:$0xff] }
  0x2e   :  { %1463 = vmatpush3.bf16.msra.mxu0 %v1460_v22  ;;  %1494 = vmatpush3.bf16.msra.mxu1 %v1460_v22  ;;  %v65_v22 = vld [vmem:[#allocation2 + $0x110] sm:$0xff] }
  0x2f   :  { %1465 = vmatprep.subr.bf16.mxu0 %v1464_v25  ;;  %1487 = vmatprep.subr.bf16.mxu1 %v1464_v25 }
  0x32   :  { %1467 = vmatpush3.bf16.msra.mxu0 %v1464_v25  ;;  %1495 = vmatpush3.bf16.msra.mxu1 %v1464_v25  ;;  %v835_v25 = vld [vmem:[%s2904_s3 + $0x8] sm:$0xff] }
  0x35   :  { %1319 = vmatmul.mubr.f32.vlgmr.msra.gmra.mrb[0].mxu0 %v32_v26  ;;  %1373 = vmatmul.mubr.f32.vlgmr.msra.gmra.mrb[0].mxu1 %v68_v27  ;;  %v2906_v26 = vmov 0.0|0.0   ;;  %v1626_v27 = vpack.c.bf16 %v835_v25, %v834_v24 }
  0x36   :  { %1321 = vmatprep.mubr.f32.mxu0 %v33_v28  ;;  %1375 = vmatprep.mubr.f32.mxu1 %v69_v29  ;;  %v836_v28 = vld [vmem:[%s2904_s3 + $0x10] sm:$0xff]  ;;  %v837_v29 = vld [vmem:[%s2904_s3 + $0x18] sm:$0xff] }
  0x37   :  { %1468 = vmatprep.subr.bf16.mxu1 %v2906_v26 }
  0x38   :  { %1470 = vmatpush3.bf16.msra.mxu1 %v1626_v27 }
  0x39   :  { %1322 = vmatmul.mubr.f32.gmra.mrb[2].mxu0 %v34_v30  ;;  %1376 = vmatmul.mubr.f32.gmra.mrb[2].mxu1 %v70_v31  ;;  %v1636_v30 = vpack.c.bf16 %v837_v29, %v836_v28  ;;  %v1641_v31 = vld [vmem:[%s2903_s2] ss:$0 sm:$0xff] }
  0x3a   :  { %1324 = vmatprep.mubr.f32.mxu0 %v35_v32  ;;  %1378 = vmatprep.mubr.f32.mxu1 %v71_v33 }
  0x3b   :  { %1471 = vmatprep.subr.bf16.mxu1 %v2906_v26 }
  0x3c   :  { %1473 = vmatpush3.bf16.msra.mxu1 %v1636_v30 }
  0x3d   :  { %1325 = vmatmul.mubr.f32.gmra.mrb[4].mxu0 %v36_v34  ;;  %1379 = vmatmul.mubr.f32.gmra.mrb[4].mxu1 %v72_v35 }
  0x3e   :  { %1327 = vmatprep.mubr.f32.mxu0 %v37_v36  ;;  %1381 = vmatprep.mubr.f32.mxu1 %v73_v37 }
  0x3f   :  { %1474 = vmatprep.subr.bf16.mxu1 %v2906_v26 }
  0x41   :  { %1328 = vmatmul.mubr.f32.gmra.mrb[6].mxu0 %v38_v38  ;;  %1382 = vmatmul.mubr.f32.gmra.mrb[6].mxu1 %v74_v39 }
  0x42   :  { %1330 = vmatprep.mubr.f32.mxu0 %v39_v40  ;;  %1384 = vmatprep.mubr.f32.mxu1 %v75_v41 }
  0x45   :  { %1331 = vmatmul.mubr.f32.gmra.mrb[8].mxu0 %v40_v42  ;;  %1385 = vmatmul.mubr.f32.gmra.mrb[8].mxu1 %v76_v43 }
  0x46   :  { %1333 = vmatprep.mubr.f32.mxu0 %v41_v44  ;;  %1387 = vmatprep.mubr.f32.mxu1 %v77_v45 }
  0x49   :  { %1334 = vmatmul.mubr.f32.gmra.mrb[10].mxu0 %v42_v46  ;;  %1388 = vmatmul.mubr.f32.gmra.mrb[10].mxu1 %v78_v47 }
  0x4a   :  { %1336 = vmatprep.mubr.f32.mxu0 %v43_v48  ;;  %1390 = vmatprep.mubr.f32.mxu1 %v79_v49 }
  0x4d   :  { %1337 = vmatmul.mubr.f32.gmra.mrb[12].mxu0 %v44_v50  ;;  %1391 = vmatmul.mubr.f32.gmra.mrb[12].mxu1 %v80_v51 }
  0x4e   :  { %1339 = vmatprep.mubr.f32.mxu0 %v45_v52  ;;  %1393 = vmatprep.mubr.f32.mxu1 %v81_v53 }
  0x51   :  { %1340 = vmatmul.mubr.f32.gmra.mrb[14].mxu0 %v46_v54  ;;  %1394 = vmatmul.mubr.f32.gmra.mrb[14].mxu1 %v82_v55 }
  0x52   :  { %1342 = vmatprep.mubr.f32.mxu0 %v47_v56  ;;  %1396 = vmatprep.mubr.f32.mxu1 %v83_v57 }
  0x55   :  { %1343 = vmatmul.mubr.f32.gmra.mrb[16].mxu0 %v48_v58  ;;  %1397 = vmatmul.mubr.f32.gmra.mrb[16].mxu1 %v84_v59 }
  0x56   :  { %1345 = vmatprep.mubr.f32.mxu0 %v49_v60  ;;  %1399 = vmatprep.mubr.f32.mxu1 %v85_v61 }
  0x59   :  { %1346 = vmatmul.mubr.f32.gmra.mrb[18].mxu0 %v50_v62  ;;  %1400 = vmatmul.mubr.f32.gmra.mrb[18].mxu1 %v86_v63 }
  0x5a   :  { %1348 = vmatprep.mubr.f32.mxu0 %v51_v0  ;;  %1402 = vmatprep.mubr.f32.mxu1 %v87_v1 }
  0x5d   :  { %1349 = vmatmul.mubr.f32.gmra.mrb[20].mxu0 %v52_v2  ;;  %1403 = vmatmul.mubr.f32.gmra.mrb[20].mxu1 %v88_v3 }
  0x5e   :  { %1351 = vmatprep.mubr.f32.mxu0 %v53_v4  ;;  %1405 = vmatprep.mubr.f32.mxu1 %v89_v5 }
  0x61   :  { %1352 = vmatmul.mubr.f32.gmra.mrb[22].mxu0 %v54_v6  ;;  %1406 = vmatmul.mubr.f32.gmra.mrb[22].mxu1 %v90_v7 }
  0x62   :  { %1354 = vmatprep.mubr.f32.mxu0 %v55_v8  ;;  %1408 = vmatprep.mubr.f32.mxu1 %v91_v9 }
  0x65   :  { %1355 = vmatmul.mubr.f32.gmra.mrb[24].mxu0 %v56_v10  ;;  %1409 = vmatmul.mubr.f32.gmra.mrb[24].mxu1 %v92_v11 }
  0x66   :  { %1357 = vmatprep.mubr.f32.mxu0 %v57_v12  ;;  %1411 = vmatprep.mubr.f32.mxu1 %v93_v13 }
  0x69   :  { %1358 = vmatmul.mubr.f32.gmra.mrb[26].mxu0 %v58_v14  ;;  %1412 = vmatmul.mubr.f32.gmra.mrb[26].mxu1 %v94_v15 }
  0x6a   :  { %1360 = vmatprep.mubr.f32.mxu0 %v59_v16 }
  0x6d   :  { %1361 = vmatmul.mubr.f32.gmra.mrb[28].mxu0 %v60_v17 }
  0x6e   :  { %1363 = vmatprep.mubr.f32.mxu0 %v61_v18 }
  0x71   :  { %1364 = vmatmul.mubr.f32.gmra.mrb[30].mxu0 %v62_v19 }
  0x72   :  { %1366 = vmatprep.mubr.f32.mxu0 %v63_v20 }
  0x75   :  { %1367 = vmatmul.mubr.f32.gmra.mrb[32].mxu0 %v64_v21 }
  0x76   :  { %1369 = vmatprep.mubr.f32.mxu0 %v65_v22 }
  0x79   :  { %1370 = vmatmul.mubr.f32.gmra.mrb[34].mxu0 %v66_v23 }
 0x108   :  { %v1320_v32 = vpop.f32.mrb[0].mxu0  ;;  %v1645_v33 = vpop.f32.mrb[0].mxu1 }
 0x109   :  { %v1648_v34 = vadd.f32 %v1320_v32, %v1641_v31  ;;  %v184_v35 = vpop.f32.mrb[1].mxu0  ;;  %v1650_v36 = vpop.f32.mrb[1].mxu1 }
 0x10a   :  { %v1653_v37 = vadd.f32 %v1641_v31, %v184_v35 }
 0x10b   :  { %v638_v38 = vmul.f32 %v1648_v34, %v1648_v34  ;;  %v505_v39 = vsel %vm503_vm0, %v1648_v34, 0.0 }
 0x10c   :  { %v504_v40 = vsel %vm503_vm0, %v1653_v37, 0.0  ;;  %v637_v41 = vmul.f32 %v1653_v37, %v1653_v37  ;;  %v1323_v42 = vpop.f32.mrb[2].mxu0  ;;  %v1663_v43 = vpop.f32.mrb[2].mxu1 }
 0x10d   :  { %v1666_v44 = vadd.f32 %v1323_v42, %v1641_v31  ;;  %v194_v45 = vpop.f32.mrb[3].mxu0  ;;  %v1668_v46 = vpop.f32.mrb[3].mxu1  ;;  %v702_v47 = vsel %vm503_vm0, %v638_v38, 0.0  ;;  %v506_v50 = vadd.f32 %v505_v39, %v504_v40 }
 0x10e   :  { %v701_v48 = vsel %vm503_vm0, %v637_v41, 0.0  ;;  %v1673_v49 = vadd.f32 %v1641_v31, %v194_v45 }
 0x10f   :  { %v640_v51 = vmul.f32 %v1666_v44, %v1666_v44  ;;  %v703_v56 = vadd.f32 %v702_v47, %v701_v48  ;;  %v509_v61 = vsel %vm503_vm0, %v1666_v44, 0.0 }
 0x110   :  { %v507_v52 = vsel %vm503_vm0, %v1673_v49, 0.0  ;;  %v639_v53 = vmul.f32 %v1673_v49, %v1673_v49  ;;  %v1326_v54 = vpop.f32.mrb[4].mxu0  ;;  %v1681_v55 = vpop.f32.mrb[4].mxu1 }
 0x111   :  { %v508_v57 = vadd.f32 %v507_v52, %v506_v50  ;;  %v1684_v58 = vadd.f32 %v1326_v54, %v1641_v31  ;;  %v204_v59 = vpop.f32.mrb[5].mxu0  ;;  %v1686_v60 = vpop.f32.mrb[5].mxu1  ;;  %v706_v2 = vsel %vm503_vm0, %v640_v51, 0.0 }
 0x112   :  { %v704_v62 = vsel %vm503_vm0, %v639_v53, 0.0  ;;  %v1692_v63 = vadd.f32 %v1641_v31, %v204_v59 }
 0x113   :  { %v510_v0 = vadd.f32 %v509_v61, %v508_v57  ;;  %v705_v1 = vadd.f32 %v704_v62, %v703_v56  ;;  %v642_v3 = vmul.f32 %v1684_v58, %v1684_v58  ;;  %v513_v13 = vsel %vm503_vm0, %v1684_v58, 0.0 }
 0x114   :  { %v511_v4 = vsel %vm503_vm0, %v1692_v63, 0.0  ;;  %v641_v5 = vmul.f32 %v1692_v63, %v1692_v63  ;;  %v1329_v6 = vpop.f32.mrb[6].mxu0  ;;  %v1701_v7 = vpop.f32.mrb[6].mxu1 }
 0x115   :  { %v707_v8 = vadd.f32 %v706_v2, %v705_v1  ;;  %v512_v9 = vadd.f32 %v511_v4, %v510_v0  ;;  %v1704_v10 = vadd.f32 %v1329_v6, %v1641_v31  ;;  %v214_v11 = vpop.f32.mrb[7].mxu0  ;;  %v1706_v12 = vpop.f32.mrb[7].mxu1  ;;  %v710_v18 = vsel %vm503_vm0, %v642_v3, 0.0 }
 0x116   :  { %v708_v14 = vsel %vm503_vm0, %v641_v5, 0.0  ;;  %v1712_v15 = vadd.f32 %v1641_v31, %v214_v11 }
 0x117   :  { %v709_v16 = vadd.f32 %v708_v14, %v707_v8  ;;  %v514_v17 = vadd.f32 %v513_v13, %v512_v9  ;;  %v644_v19 = vmul.f32 %v1704_v10, %v1704_v10  ;;  %v517_v35 = vsel %vm503_vm0, %v1704_v10, 0.0 }
 0x118   :  { %v515_v20 = vsel %vm503_vm0, %v1712_v15, 0.0  ;;  %v643_v21 = vmul.f32 %v1712_v15, %v1712_v15  ;;  %v1332_v22 = vpop.f32.mrb[8].mxu0  ;;  %v1721_v23 = vpop.f32.mrb[8].mxu1 }
 0x119   :  { %v516_v24 = vadd.f32 %v515_v20, %v514_v17  ;;  %v711_v25 = vadd.f32 %v710_v18, %v709_v16  ;;  %v1724_v28 = vadd.f32 %v1332_v22, %v1641_v31  ;;  %v224_v29 = vpop.f32.mrb[9].mxu0  ;;  %v1726_v32 = vpop.f32.mrb[9].mxu1  ;;  %v714_v42 = vsel %vm503_vm0, %v644_v19, 0.0 }
 0x11a   :  { %v712_v38 = vsel %vm503_vm0, %v643_v21, 0.0  ;;  %v1732_v39 = vadd.f32 %v1641_v31, %v224_v29 }
 0x11b   :  { %v713_v40 = vadd.f32 %v712_v38, %v711_v25  ;;  %v518_v41 = vadd.f32 %v517_v35, %v516_v24  ;;  %v646_v45 = vmul.f32 %v1724_v28, %v1724_v28  ;;  %v521_v59 = vsel %vm503_vm0, %v1724_v28, 0.0 }
 0x11c   :  { %v519_v47 = vsel %vm503_vm0, %v1732_v39, 0.0  ;;  %v645_v48 = vmul.f32 %v1732_v39, %v1732_v39  ;;  %v1335_v50 = vpop.f32.mrb[10].mxu0  ;;  %v1741_v51 = vpop.f32.mrb[10].mxu1 }
 0x11d   :  { %v520_v52 = vadd.f32 %v519_v47, %v518_v41  ;;  %v715_v53 = vadd.f32 %v714_v42, %v713_v40  ;;  %v1744_v54 = vadd.f32 %v1335_v50, %v1641_v31  ;;  %v234_v56 = vpop.f32.mrb[11].mxu0  ;;  %v1746_v57 = vpop.f32.mrb[11].mxu1  ;;  %v718_v2 = vsel %vm503_vm0, %v646_v45, 0.0 }
 0x11e   :  { %v716_v61 = vsel %vm503_vm0, %v645_v48, 0.0  ;;  %v1752_v62 = vadd.f32 %v1641_v31, %v234_v56 }
 0x11f   :  { %v717_v0 = vadd.f32 %v716_v61, %v715_v53  ;;  %v522_v1 = vadd.f32 %v521_v59, %v520_v52  ;;  %v648_v3 = vmul.f32 %v1744_v54, %v1744_v54  ;;  %v525_v17 = vsel %vm503_vm0, %v1744_v54, 0.0 }
 0x120   :  { %v523_v4 = vsel %vm503_vm0, %v1752_v62, 0.0  ;;  %v647_v5 = vmul.f32 %v1752_v62, %v1752_v62  ;;  %v1338_v6 = vpop.f32.mrb[12].mxu0  ;;  %v1761_v8 = vpop.f32.mrb[12].mxu1 }
 0x121   :  { %v524_v9 = vadd.f32 %v523_v4, %v522_v1  ;;  %v719_v11 = vadd.f32 %v718_v2, %v717_v0  ;;  %v1764_v13 = vadd.f32 %v1338_v6, %v1641_v31  ;;  %v244_v14 = vpop.f32.mrb[13].mxu0  ;;  %v1766_v16 = vpop.f32.mrb[13].mxu1  ;;  %v722_v22 = vsel %vm503_vm0, %v648_v3, 0.0 }
 0x122   :  { %v720_v18 = vsel %vm503_vm0, %v647_v5, 0.0  ;;  %v1772_v19 = vadd.f32 %v1641_v31, %v244_v14 }
 0x123   :  { %v721_v20 = vadd.f32 %v720_v18, %v719_v11  ;;  %v526_v21 = vadd.f32 %v525_v17, %v524_v9  ;;  %v650_v24 = vmul.f32 %v1764_v13, %v1764_v13  ;;  %v529_v48 = vsel %vm503_vm0, %v1764_v13, 0.0 }
 0x124   :  { %v527_v25 = vsel %vm503_vm0, %v1772_v19, 0.0  ;;  %v649_v29 = vmul.f32 %v1772_v19, %v1772_v19  ;;  %v1341_v35 = vpop.f32.mrb[14].mxu0  ;;  %v1781_v38 = vpop.f32.mrb[14].mxu1 }
 0x125   :  { %v528_v40 = vadd.f32 %v527_v25, %v526_v21  ;;  %v723_v41 = vadd.f32 %v722_v22, %v721_v20  ;;  %v1784_v42 = vadd.f32 %v1341_v35, %v1641_v31  ;;  %v254_v45 = vpop.f32.mrb[15].mxu0  ;;  %v1786_v47 = vpop.f32.mrb[15].mxu1  ;;  %v726_v59 = vsel %vm503_vm0, %v650_v24, 0.0 }
 0x126   :  { %v724_v50 = vsel %vm503_vm0, %v649_v29, 0.0  ;;  %v1792_v52 = vadd.f32 %v1641_v31, %v254_v45 }
 0x127   :  { %2966 = vst [vmem:[#allocation5_spill] sm:$0xff] %v1784_v42  ;;  %v725_v53 = vadd.f32 %v724_v50, %v723_v41  ;;  %v530_v56 = vadd.f32 %v529_v48, %v528_v40  ;;  %v652_v61 = vmul.f32 %v1784_v42, %v1784_v42  ;;  %v533_v14 = vsel %vm503_vm0, %v1784_v42, 0.0 }
 0x128   :  { %2967 = vst [vmem:[#allocation6_spill] sm:$0xff] %v1792_v52  ;;  %v531_v0 = vsel %vm503_vm0, %v1792_v52, 0.0  ;;  %v651_v1 = vmul.f32 %v1792_v52, %v1792_v52  ;;  %v1344_v2 = vpop.f32.mrb[16].mxu0  ;;  %v1801_v3 = vpop.f32.mrb[16].mxu1 }
 0x129   :  { %v532_v4 = vadd.f32 %v531_v0, %v530_v56  ;;  %v727_v5 = vadd.f32 %v726_v59, %v725_v53  ;;  %v1804_v6 = vadd.f32 %v1344_v2, %v1641_v31  ;;  %v264_v9 = vpop.f32.mrb[17].mxu0  ;;  %v1806_v11 = vpop.f32.mrb[17].mxu1  ;;  %v730_v22 = vsel %vm503_vm0, %v652_v61, 0.0 }
 0x12a   :  { %v728_v17 = vsel %vm503_vm0, %v651_v1, 0.0  ;;  %v1812_v18 = vadd.f32 %v1641_v31, %v264_v9 }
 0x12b   :  { %2968 = vst [vmem:[#allocation7_spill] sm:$0xff] %v1804_v6  ;;  %v729_v20 = vadd.f32 %v728_v17, %v727_v5  ;;  %v534_v21 = vadd.f32 %v533_v14, %v532_v4  ;;  %v654_v24 = vmul.f32 %v1804_v6, %v1804_v6  ;;  %v537_v56 = vsel %vm503_vm0, %v1804_v6, 0.0 }
 0x12c   :  { %2969 = vst [vmem:[#allocation8_spill] sm:$0xff] %v1812_v18  ;;  %v535_v25 = vsel %vm503_vm0, %v1812_v18, 0.0  ;;  %v653_v29 = vmul.f32 %v1812_v18, %v1812_v18  ;;  %v1347_v35 = vpop.f32.mrb[18].mxu0  ;;  %v1821_v40 = vpop.f32.mrb[18].mxu1 }
 0x12d   :  { %v536_v41 = vadd.f32 %v535_v25, %v534_v21  ;;  %v731_v45 = vadd.f32 %v730_v22, %v729_v20  ;;  %v1824_v48 = vadd.f32 %v1347_v35, %v1641_v31  ;;  %v274_v50 = vpop.f32.mrb[19].mxu0  ;;  %v1826_v53 = vpop.f32.mrb[19].mxu1  ;;  %v734_v2 = vsel %vm503_vm0, %v654_v24, 0.0 }
 0x12e   :  { %v732_v59 = vsel %vm503_vm0, %v653_v29, 0.0  ;;  %v1832_v61 = vadd.f32 %v1641_v31, %v274_v50 }
 0x12f   :  { %2970 = vst [vmem:[#allocation9_spill] sm:$0xff] %v1824_v48  ;;  %v733_v0 = vadd.f32 %v732_v59, %v731_v45  ;;  %v538_v1 = vadd.f32 %v537_v56, %v536_v41  ;;  %v656_v4 = vmul.f32 %v1824_v48, %v1824_v48  ;;  %v541_v24 = vsel %vm503_vm0, %v1824_v48, 0.0 }
 0x130   :  { %2971 = vst [vmem:[#allocation10_spill] sm:$0xff] %v1832_v61  ;;  %v539_v5 = vsel %vm503_vm0, %v1832_v61, 0.0  ;;  %v655_v9 = vmul.f32 %v1832_v61, %v1832_v61  ;;  %v1350_v14 = vpop.f32.mrb[20].mxu0  ;;  %v1841_v17 = vpop.f32.mrb[20].mxu1 }
 0x131   :  { %v540_v20 = vadd.f32 %v539_v5, %v538_v1  ;;  %v735_v21 = vadd.f32 %v734_v2, %v733_v0  ;;  %v1844_v22 = vadd.f32 %v1350_v14, %v1641_v31  ;;  %v284_v25 = vpop.f32.mrb[21].mxu0  ;;  %v1846_v29 = vpop.f32.mrb[21].mxu1  ;;  %v738_v56 = vsel %vm503_vm0, %v656_v4, 0.0 }
 0x132   :  { %v736_v35 = vsel %vm503_vm0, %v655_v9, 0.0  ;;  %v1852_v41 = vadd.f32 %v1641_v31, %v284_v25 }
 0x133   :  { %2972 = vst [vmem:[#allocation11_spill] sm:$0xff] %v1844_v22  ;;  %v737_v45 = vadd.f32 %v736_v35, %v735_v21  ;;  %v542_v50 = vadd.f32 %v541_v24, %v540_v20  ;;  %v658_v59 = vmul.f32 %v1844_v22, %v1844_v22  ;;  %v545_v4 = vsel %vm503_vm0, %v1844_v22, 0.0 }
 0x134   :  { %2973 = vst [vmem:[#allocation12_spill] sm:$0xff] %v1852_v41  ;;  %v543_v0 = vsel %vm503_vm0, %v1852_v41, 0.0  ;;  %v657_v1 = vmul.f32 %v1852_v41, %v1852_v41  ;;  %v1353_v2 = vpop.f32.mrb[22].mxu0  ;;  %v1861_v5 = vpop.f32.mrb[22].mxu1 }
 0x135   :  { %v544_v9 = vadd.f32 %v543_v0, %v542_v50  ;;  %v739_v14 = vadd.f32 %v738_v56, %v737_v45  ;;  %v1864_v25 = vadd.f32 %v1353_v2, %v1641_v31  ;;  %v294_v20 = vpop.f32.mrb[23].mxu0  ;;  %v1866_v21 = vpop.f32.mrb[23].mxu1  ;;  %v742_v48 = vsel %vm503_vm0, %v658_v59, 0.0 }
 0x136   :  { %v740_v24 = vsel %vm503_vm0, %v657_v1, 0.0  ;;  %v1872_v35 = vadd.f32 %v1641_v31, %v294_v20 }
 0x137   :  { %2974 = vst [vmem:[#allocation13_spill] sm:$0xff] %v1864_v25  ;;  %v741_v26 = vadd.f32 %v740_v24, %v739_v14  ;;  %v546_v41 = vadd.f32 %v545_v4, %v544_v9  ;;  %v660_v45 = vmul.f32 %v1864_v25, %v1864_v25  ;;  %v549_v59 = vsel %vm503_vm0, %v1864_v25, 0.0 }
 0x138   :  { %2975 = vst [vmem:[#allocation14_spill] sm:$0xff] %v1872_v35  ;;  %v547_v50 = vsel %vm503_vm0, %v1872_v35, 0.0  ;;  %v659_v56 = vmul.f32 %v1872_v35, %v1872_v35  ;;  %v1356_v0 = vpop.f32.mrb[24].mxu0  ;;  %v1881_v2 = vpop.f32.mrb[24].mxu1 }
 0x139   :  { %v548_v1 = vadd.f32 %v547_v50, %v546_v41  ;;  %v743_v22 = vadd.f32 %v742_v48, %v741_v26  ;;  %v1884_v20 = vadd.f32 %v1356_v0, %v1641_v31  ;;  %v304_v9 = vpop.f32.mrb[25].mxu0  ;;  %v1886_v14 = vpop.f32.mrb[25].mxu1  ;;  %v746_v6 = vsel %vm503_vm0, %v660_v45, 0.0 }
 0x13a   :  { %v744_v4 = vsel %vm503_vm0, %v659_v56, 0.0  ;;  %v1892_v24 = vadd.f32 %v1641_v31, %v304_v9 }
 0x13b   :  { %2976 = vst [vmem:[#allocation15_spill] sm:$0xff] %v1884_v20  ;;  %v745_v35 = vadd.f32 %v744_v4, %v743_v22  ;;  %v550_v61 = vadd.f32 %v549_v59, %v548_v1  ;;  %v662_v26 = vmul.f32 %v1884_v20, %v1884_v20  ;;  %v553_v45 = vsel %vm503_vm0, %v1884_v20, 0.0 }
 0x13c   :  { %2977 = vst [vmem:[#allocation16_spill] sm:$0xff] %v1892_v24  ;;  %v551_v48 = vsel %vm503_vm0, %v1892_v24, 0.0  ;;  %v661_v41 = vmul.f32 %v1892_v24, %v1892_v24  ;;  %v1359_v50 = vpop.f32.mrb[26].mxu0  ;;  %v1901_v0 = vpop.f32.mrb[26].mxu1 }
 0x13d   :  { %v552_v56 = vadd.f32 %v551_v48, %v550_v61  ;;  %v747_v25 = vadd.f32 %v746_v6, %v745_v35  ;;  %v1904_v9 = vadd.f32 %v1359_v50, %v1641_v31  ;;  %v314_v22 = vpop.f32.mrb[27].mxu0  ;;  %v1906_v1 = vpop.f32.mrb[27].mxu1  ;;  %v750_v42 = vsel %vm503_vm0, %v662_v26, 0.0 }
 0x13e   :  { %v748_v59 = vsel %vm503_vm0, %v661_v41, 0.0  ;;  %v1912_v4 = vadd.f32 %v1641_v31, %v314_v22 }
 0x13f   :  { %2978 = vst [vmem:[#allocation17_spill] sm:$0xff] %v1904_v9  ;;  %v749_v24 = vadd.f32 %v748_v59, %v747_v25  ;;  %v554_v18 = vadd.f32 %v553_v45, %v552_v56  ;;  %v664_v6 = vmul.f32 %v1904_v9, %v1904_v9  ;;  %v557_v25 = vsel %vm503_vm0, %v1904_v9, 0.0 }
 0x140   :  { %2979 = vst [vmem:[#allocation18_spill] sm:$0xff] %v1912_v4  ;;  %v555_v61 = vsel %vm503_vm0, %v1912_v4, 0.0  ;;  %v663_v35 = vmul.f32 %v1912_v4, %v1912_v4  ;;  %v1362_v48 = vpop.f32.mrb[28].mxu0 }
 0x141   :  { %v556_v50 = vadd.f32 %v555_v61, %v554_v18  ;;  %v751_v20 = vadd.f32 %v750_v42, %v749_v24  ;;  %v1922_v41 = vadd.f32 %v1362_v48, %v1641_v31  ;;  %v324_v22 = vpop.f32.mrb[29].mxu0  ;;  %v754_v52 = vsel %vm503_vm0, %v664_v6, 0.0 }
 0x142   :  { %v752_v26 = vsel %vm503_vm0, %v663_v35, 0.0  ;;  %v1928_v56 = vadd.f32 %v1641_v31, %v324_v22 }
 0x143   :  { %2980 = vst [vmem:[#allocation19_spill] sm:$0xff] %v1922_v41  ;;  %v753_v45 = vadd.f32 %v752_v26, %v751_v20  ;;  %v558_v59 = vadd.f32 %v557_v25, %v556_v50  ;;  %v666_v18 = vmul.f32 %v1922_v41, %v1922_v41  ;;  %v561_v20 = vsel %vm503_vm0, %v1922_v41, 0.0 }
 0x144   :  { %v559_v42 = vsel %vm503_vm0, %v1928_v56, 0.0  ;;  %v665_v24 = vmul.f32 %v1928_v56, %v1928_v56  ;;  %v1365_v61 = vpop.f32.mrb[30].mxu0 }
 0x145   :  { %v560_v48 = vadd.f32 %v559_v42, %v558_v59  ;;  %v755_v9 = vadd.f32 %v754_v52, %v753_v45  ;;  %v1938_v35 = vadd.f32 %v1365_v61, %v1641_v31  ;;  %v334_v22 = vpop.f32.mrb[31].mxu0  ;;  %v758_v4 = vsel %vm503_vm0, %v666_v18, 0.0 }
 0x146   :  { %v756_v6 = vsel %vm503_vm0, %v665_v24, 0.0  ;;  %v1944_v50 = vadd.f32 %v1641_v31, %v334_v22 }
 0x147   :  { %2981 = vst [vmem:[#allocation20_spill] sm:$0xff] %v1938_v35  ;;  %v757_v25 = vadd.f32 %v756_v6, %v755_v9  ;;  %v562_v26 = vadd.f32 %v561_v20, %v560_v48  ;;  %v668_v59 = vmul.f32 %v1938_v35, %v1938_v35  ;;  %v565_v9 = vsel %vm503_vm0, %v1938_v35, 0.0 }
 0x148   :  { %2982 = vst [vmem:[#allocation21_spill] sm:$0xff] %v1944_v50  ;;  %v563_v52 = vsel %vm503_vm0, %v1944_v50, 0.0  ;;  %v667_v45 = vmul.f32 %v1944_v50, %v1944_v50  ;;  %v1368_v42 = vpop.f32.mrb[32].mxu0  ;;  %v1964_v50 = vadd.f32 %v1641_v31, %v1650_v36 }
 0x149   :  { %v564_v61 = vadd.f32 %v563_v52, %v562_v26  ;;  %v759_v41 = vadd.f32 %v758_v4, %v757_v25  ;;  %v1954_v24 = vadd.f32 %v1368_v42, %v1641_v31  ;;  %v344_v22 = vpop.f32.mrb[33].mxu0  ;;  %v762_v4 = vsel %vm503_vm0, %v668_v59, 0.0 }
 0x14a   :  { %v760_v18 = vsel %vm503_vm0, %v667_v45, 0.0  ;;  %v1960_v48 = vadd.f32 %v1641_v31, %v344_v22  ;;  %2985 = vst [vmem:[#allocation24_spill] sm:$0xff] %v1964_v50 }
 0x14b   :  { %2983 = vst [vmem:[#allocation22_spill] sm:$0xff] %v1954_v24  ;;  %v761_v20 = vadd.f32 %v760_v18, %v759_v41  ;;  %v566_v6 = vadd.f32 %v565_v9, %v564_v61  ;;  %v670_v25 = vmul.f32 %v1954_v24, %v1954_v24  ;;  %v569_v36 = vsel %vm503_vm0, %v1954_v24, 0.0 }
 0x14c   :  { %2984 = vst [vmem:[#allocation23_spill] sm:$0xff] %v1960_v48  ;;  %v567_v26 = vsel %vm503_vm0, %v1960_v48, 0.0  ;;  %v669_v52 = vmul.f32 %v1960_v48, %v1960_v48  ;;  %v1371_v45 = vpop.f32.mrb[34].mxu0  ;;  %v1984_v18 = vadd.f32 %v1645_v33, %v1641_v31  ;;  %v2010_v24 = vadd.f32 %v1641_v31, %v1686_v60 }
 0x14d   :  { %v568_v42 = vadd.f32 %v567_v26, %v566_v6  ;;  %v763_v22 = vadd.f32 %v762_v4, %v761_v20  ;;  %v1974_v41 = vadd.f32 %v1371_v45, %v1641_v31  ;;  %v354_v61 = vpop.f32.mrb[35].mxu0  ;;  %v673_v20 = vmul.f32 %v1964_v50, %v1964_v50 }
 0x14e   :  { %v764_v59 = vsel %vm503_vm0, %v669_v52, 0.0  ;;  %v1980_v9 = vadd.f32 %v1641_v31, %v354_v61  ;;  %v1990_v6 = vadd.f32 %v1641_v31, %v1668_v46  ;;  %v766_v4 = vsel %vm503_vm0, %v670_v25, 0.0 }
 0x14f   :  { %v765_v48 = vadd.f32 %v764_v59, %v763_v22  ;;  %v570_v35 = vadd.f32 %v569_v36, %v568_v42  ;;  %v672_v26 = vmul.f32 %v1974_v41, %v1974_v41  ;;  %v573_v22 = vsel %vm503_vm0, %v1974_v41, 0.0 }
 0x150   :  { %v571_v52 = vsel %vm503_vm0, %v1980_v9, 0.0  ;;  %v671_v33 = vmul.f32 %v1980_v9, %v1980_v9  ;;  %v575_v46 = vsel %vm503_vm0, %v1964_v50, 0.0  ;;  %v2006_v25 = vadd.f32 %v1663_v43, %v1641_v31 }
 0x151   :  { %v572_v45 = vadd.f32 %v571_v52, %v570_v35  ;;  %v767_v42 = vadd.f32 %v766_v4, %v765_v48  ;;  %v770_v35 = vsel %vm503_vm0, %v672_v26, 0.0  ;;  %v674_v48 = vmul.f32 %v1984_v18, %v1984_v18 }
 0x152   :  { %v768_v61 = vsel %vm503_vm0, %v671_v33, 0.0  ;;  %v772_v4 = vsel %vm503_vm0, %v673_v20, 0.0  ;;  %v675_v52 = vmul.f32 %v1990_v6, %v1990_v6  ;;  %v577_v43 = vsel %vm503_vm0, %v1984_v18, 0.0 }
 0x153   :  { %v769_v36 = vadd.f32 %v768_v61, %v767_v42  ;;  %v574_v59 = vadd.f32 %v573_v22, %v572_v45  ;;  %v676_v45 = vmul.f32 %v2006_v25, %v2006_v25  ;;  %v579_v60 = vsel %vm503_vm0, %v1990_v6, 0.0 }
 0x154   :  { %v2026_v22 = vadd.f32 %v1681_v55, %v1641_v31  ;;  %v677_v20 = vmul.f32 %v2010_v24, %v2010_v24  ;;  %v774_v61 = vsel %vm503_vm0, %v674_v48, 0.0  ;;  %v583_v55 = vsel %vm503_vm0, %v2010_v24, 0.0 }
 0x155   :  { %v576_v33 = vadd.f32 %v575_v46, %v574_v59  ;;  %v771_v50 = vadd.f32 %v770_v35, %v769_v36  ;;  %v776_v46 = vsel %vm503_vm0, %v675_v52, 0.0  ;;  %v2034_v36 = vadd.f32 %v1641_v31, %v1706_v12 }
 0x156   :  { %v678_v48 = vmul.f32 %v2026_v22, %v2026_v22  ;;  %v780_v52 = vsel %vm503_vm0, %v677_v20, 0.0  ;;  %v2046_v12 = vadd.f32 %v1701_v7, %v1641_v31  ;;  %v2947_v20 = vmov 0.0  }
 0x157   :  { %v773_v26 = vadd.f32 %v772_v4, %v771_v50  ;;  %v578_v42 = vadd.f32 %v577_v43, %v576_v33  ;;  %v581_v50 = vsel %vm503_vm0, %v2006_v25, 0.0  ;;  %v778_v4 = vsel %vm503_vm0, %v676_v45, 0.0  ;;  %1422 = vmatprep.mubr.msk.f32.mxu1 %vm1532_vm1, %v2947_v20 }
 0x158   :  { %v2052_v45 = vadd.f32 %v1641_v31, %v1726_v32  ;;  %v782_v7 = vsel %vm503_vm0, %v678_v48, 0.0  ;;  %v2063_v32 = vadd.f32 %v1721_v23, %v1641_v31 }
 0x159   :  { %v580_v59 = vadd.f32 %v579_v60, %v578_v42  ;;  %v775_v35 = vadd.f32 %v774_v61, %v773_v26  ;;  %v679_v60 = vmul.f32 %v2034_v36, %v2034_v36  ;;  %v585_v61 = vsel %vm503_vm0, %v2026_v22, 0.0 }
 0x15a   :  { %2986 = vst [vmem:[#allocation25_spill] sm:$0xff] %v2063_v32  ;;  %v591_v23 = vsel %vm503_vm0, %v2052_v45, 0.0 }
 0x15b   :  { %v777_v33 = vadd.f32 %v776_v46, %v775_v35  ;;  %v582_v43 = vadd.f32 %v581_v50, %v580_v59  ;;  %v587_v46 = vsel %vm503_vm0, %v2034_v36, 0.0  ;;  %v680_v50 = vmul.f32 %v2046_v12, %v2046_v12 }
 0x15d   :  { %v584_v26 = vadd.f32 %v583_v55, %v582_v43  ;;  %v779_v42 = vadd.f32 %v778_v4, %v777_v33  ;;  %v784_v4 = vsel %vm503_vm0, %v679_v60, 0.0  ;;  %v681_v55 = vmul.f32 %v2052_v45, %v2052_v45 }
 0x15e   :  { %v2072_v33 = vadd.f32 %v1641_v31, %v1746_v57  ;;  %v786_v57 = vsel %vm503_vm0, %v680_v50, 0.0 }
 0x15f   :  { %v781_v59 = vadd.f32 %v780_v52, %v779_v42  ;;  %v586_v35 = vadd.f32 %v585_v61, %v584_v26  ;;  %v589_v52 = vsel %vm503_vm0, %v2046_v12, 0.0  ;;  %v682_v42 = vmul.f32 %v2063_v32, %v2063_v32 }
 0x160   :  { %v2082_v61 = vadd.f32 %v1741_v51, %v1641_v31  ;;  %v595_v51 = vsel %vm503_vm0, %v2072_v33, 0.0 }
 0x161   :  { %v588_v43 = vadd.f32 %v587_v46, %v586_v35  ;;  %v783_v48 = vadd.f32 %v782_v7, %v781_v59  ;;  %v788_v46 = vsel %vm503_vm0, %v681_v55, 0.0  ;;  %v683_v7 = vmul.f32 %v2072_v33, %v2072_v33 }
 0x162   :  { %v2090_v59 = vadd.f32 %v1641_v31, %v1766_v16  ;;  %v684_v55 = vmul.f32 %v2082_v61, %v2082_v61  ;;  %v2102_v16 = vadd.f32 %v1761_v8, %v1641_v31 }
 0x163   :  { %v785_v26 = vadd.f32 %v784_v4, %v783_v48  ;;  %v590_v60 = vadd.f32 %v589_v52, %v588_v43  ;;  %v593_v43 = vsel %vm503_vm0, %v2063_v32, 0.0  ;;  %v790_v48 = vsel %vm503_vm0, %v682_v42, 0.0 }
 0x164   :  { %v792_v20 = vsel %vm503_vm0, %v683_v7, 0.0  ;;  %v794_v7 = vsel %vm503_vm0, %v684_v55, 0.0 }
 0x165   :  { %v592_v35 = vadd.f32 %v591_v23, %v590_v60  ;;  %v787_v4 = vadd.f32 %v786_v57, %v785_v26  ;;  %v685_v23 = vmul.f32 %v2090_v59, %v2090_v59  ;;  %v2108_v26 = vadd.f32 %v1641_v31, %v1786_v47 }
 0x166   :  { %v597_v57 = vsel %vm503_vm0, %v2082_v61, 0.0  ;;  %v686_v47 = vmul.f32 %v2102_v16, %v2102_v16 }
 0x167   :  { %v789_v50 = vadd.f32 %v788_v46, %v787_v4  ;;  %v594_v52 = vadd.f32 %v593_v43, %v592_v35  ;;  %v599_v46 = vsel %vm503_vm0, %v2090_v59, 0.0  ;;  %v2117_v4 = vadd.f32 %v1781_v38, %v1641_v31 }
 0x168   :  { %v796_v43 = vsel %vm503_vm0, %v685_v23, 0.0  ;;  %v603_v38 = vsel %vm503_vm0, %v2108_v26, 0.0 }
 0x169   :  { %v596_v60 = vadd.f32 %v595_v51, %v594_v52  ;;  %v791_v42 = vadd.f32 %v790_v48, %v789_v50  ;;  %2987 = vst [vmem:[#allocation26_spill] sm:$0xff] %v2117_v4  ;;  %v687_v51 = vmul.f32 %v2108_v26, %v2108_v26  ;;  %v2126_v48 = vadd.f32 %v1641_v31, %v1806_v11 }
 0x16a   :  { %v798_v11 = vsel %vm503_vm0, %v686_v47, 0.0 }
 0x16b   :  { %v793_v35 = vadd.f32 %v792_v20, %v791_v42  ;;  %v598_v8 = vadd.f32 %v597_v57, %v596_v60  ;;  %2988 = vst [vmem:[#allocation27_spill] sm:$0xff] %v2126_v48  ;;  %v601_v20 = vsel %vm503_vm0, %v2102_v16, 0.0  ;;  %v688_v60 = vmul.f32 %v2117_v4, %v2117_v4 }
 0x16c   :  { %v2136_v42 = vadd.f32 %v1801_v3, %v1641_v31  ;;  %v800_v57 = vsel %vm503_vm0, %v687_v51, 0.0  ;;  %v607_v3 = vsel %vm503_vm0, %v2126_v48, 0.0 }
 0x16d   :  { %v600_v50 = vadd.f32 %v599_v46, %v598_v8  ;;  %v795_v55 = vadd.f32 %v794_v7, %v793_v35  ;;  %v689_v46 = vmul.f32 %v2126_v48, %v2126_v48  ;;  %v2144_v7 = vadd.f32 %v1641_v31, %v1826_v53 }
 0x16e   :  { %2989 = vst [vmem:[#allocation28_spill] sm:$0xff] %v2136_v42  ;;  %v690_v51 = vmul.f32 %v2136_v42, %v2136_v42  ;;  %v2156_v53 = vadd.f32 %v1821_v40, %v1641_v31 }
 0x16f   :  { %v797_v52 = vadd.f32 %v796_v43, %v795_v55  ;;  %v602_v23 = vadd.f32 %v601_v20, %v600_v50  ;;  %2990 = vst [vmem:[#allocation29_spill] sm:$0xff] %v2144_v7  ;;  %v605_v43 = vsel %vm503_vm0, %v2117_v4, 0.0  ;;  %v802_v50 = vsel %vm503_vm0, %v688_v60, 0.0 }
 0x170   :  { %v804_v20 = vsel %vm503_vm0, %v689_v46, 0.0  ;;  %2991 = vst [vmem:[#allocation30_spill] sm:$0xff] %v2156_v53  ;;  %v806_v46 = vsel %vm503_vm0, %v690_v51, 0.0 }
 0x171   :  { %v604_v35 = vadd.f32 %v603_v38, %v602_v23  ;;  %v799_v8 = vadd.f32 %v798_v11, %v797_v52  ;;  %v691_v38 = vmul.f32 %v2144_v7, %v2144_v7  ;;  %v2162_v52 = vadd.f32 %v1641_v31, %v1846_v29 }
 0x172   :  { %v609_v11 = vsel %vm503_vm0, %v2136_v42, 0.0  ;;  %v692_v29 = vmul.f32 %v2156_v53, %v2156_v53 }
 0x173   :  { %v801_v47 = vadd.f32 %v800_v57, %v799_v8  ;;  %v606_v55 = vadd.f32 %v605_v43, %v604_v35  ;;  %2992 = vst [vmem:[#allocation31_spill] sm:$0xff] %v2162_v52  ;;  %v611_v57 = vsel %vm503_vm0, %v2144_v7, 0.0  ;;  %v2171_v8 = vadd.f32 %v1841_v17, %v1641_v31 }
 0x174   :  { %v808_v43 = vsel %vm503_vm0, %v691_v38, 0.0  ;;  %v615_v17 = vsel %vm503_vm0, %v2162_v52, 0.0 }
 0x175   :  { %v608_v23 = vadd.f32 %v607_v3, %v606_v55  ;;  %v803_v60 = vadd.f32 %v802_v50, %v801_v47  ;;  %v693_v3 = vmul.f32 %v2162_v52, %v2162_v52  ;;  %v2180_v50 = vadd.f32 %v1641_v31, %v1866_v21 }
 0x176   :  { %v613_v55 = vsel %vm503_vm0, %v2156_v53, 0.0  ;;  %v810_v21 = vsel %vm503_vm0, %v692_v29, 0.0 }
 0x177   :  { %v805_v35 = vadd.f32 %v804_v20, %v803_v60  ;;  %v610_v40 = vadd.f32 %v609_v11, %v608_v23  ;;  %2993 = vst [vmem:[#allocation32_spill] sm:$0xff] %v2180_v50  ;;  %v694_v23 = vmul.f32 %v2171_v8, %v2171_v8  ;;  %v2190_v60 = vadd.f32 %v1861_v5, %v1641_v31 }
 0x178   :  { %v812_v11 = vsel %vm503_vm0, %v693_v3, 0.0  ;;  %v619_v5 = vsel %vm503_vm0, %v2180_v50, 0.0 }
 0x179   :  { %v612_v47 = vadd.f32 %v611_v57, %v610_v40  ;;  %v807_v51 = vadd.f32 %v806_v46, %v805_v35  ;;  %2994 = vst [vmem:[#allocation33_spill] sm:$0xff] %v2190_v60  ;;  %v695_v57 = vmul.f32 %v2180_v50, %v2180_v50  ;;  %v2198_v46 = vadd.f32 %v1641_v31, %v1886_v14 }
 0x17a   :  { %v696_v3 = vmul.f32 %v2190_v60, %v2190_v60  ;;  %v2210_v14 = vadd.f32 %v1881_v2, %v1641_v31 }
 0x17b   :  { %v809_v20 = vadd.f32 %v808_v43, %v807_v51  ;;  %v614_v38 = vadd.f32 %v613_v55, %v612_v47  ;;  %2995 = vst [vmem:[#allocation34_spill] sm:$0xff] %v2198_v46  ;;  %v617_v43 = vsel %vm503_vm0, %v2171_v8, 0.0  ;;  %v814_v47 = vsel %vm503_vm0, %v694_v23, 0.0 }
 0x17c   :  { %v816_v55 = vsel %vm503_vm0, %v695_v57, 0.0  ;;  %2996 = vst [vmem:[#allocation35_spill] sm:$0xff] %v2210_v14  ;;  %v818_v57 = vsel %vm503_vm0, %v696_v3, 0.0 }
 0x17d   :  { %v616_v35 = vadd.f32 %v615_v17, %v614_v38  ;;  %v811_v40 = vadd.f32 %v810_v21, %v809_v20  ;;  %v697_v17 = vmul.f32 %v2198_v46, %v2198_v46  ;;  %v2216_v20 = vadd.f32 %v1641_v31, %v1906_v1 }
 0x17e   :  { %v621_v21 = vsel %vm503_vm0, %v2190_v60, 0.0  ;;  %v2228_v1 = vadd.f32 %v1901_v0, %v1641_v31 }
 0x17f   :  { %v813_v29 = vadd.f32 %v812_v11, %v811_v40  ;;  %v618_v51 = vadd.f32 %v617_v43, %v616_v35  ;;  %2997 = vst [vmem:[#allocation36_spill] sm:$0xff] %v2216_v20  ;;  %v623_v11 = vsel %vm503_vm0, %v2198_v46, 0.0  ;;  %v698_v40 = vmul.f32 %v2210_v14, %v2210_v14 }
 0x180   :  { %v820_v43 = vsel %vm503_vm0, %v697_v17, 0.0  ;;  %v627_v3 = vsel %vm503_vm0, %v2216_v20, 0.0  ;;  %v700_v17 = vmul.f32 %v2228_v1, %v2228_v1 }
 0x181   :  { %v620_v38 = vadd.f32 %v619_v5, %v618_v51  ;;  %v815_v23 = vadd.f32 %v814_v47, %v813_v29  ;;  %v699_v5 = vmul.f32 %v2216_v20, %v2216_v20  ;;  %v625_v51 = vsel %vm503_vm0, %v2210_v14, 0.0 }
 0x183   :  { %v817_v35 = vadd.f32 %v816_v55, %v815_v23  ;;  %v622_v2 = vadd.f32 %v621_v21, %v620_v38  ;;  %v822_v23 = vsel %vm503_vm0, %v698_v40, 0.0  ;;  %v824_v31 = vsel %vm503_vm0, %v699_v5, 0.0 }
 0x185   :  { %v624_v47 = vadd.f32 %v623_v11, %v622_v2  ;;  %v819_v29 = vadd.f32 %v818_v57, %v817_v35  ;;  %v629_v11 = vsel %vm503_vm0, %v2228_v1, 0.0  ;;  %v826_v2 = vsel %vm503_vm0, %v700_v17, 0.0 }
 0x186   :  { %v986_v17 = vlaneseq }
 0x187   :  { %v821_v55 = vadd.f32 %v820_v43, %v819_v29  ;;  %v626_v38 = vadd.f32 %v625_v51, %v624_v47 }
 0x189   :  { %v628_v0 = vadd.f32 %v627_v3, %v626_v38  ;;  %v823_v21 = vadd.f32 %v822_v23, %v821_v55  ;;  %v2998_v3 = vmov 0.0   ;;  %v2999_v55 = vmov 0.0|0.0  }
 0x18b   :  { %v630_v57 = vadd.f32 %v629_v11, %v628_v0  ;;  %v825_v35 = vadd.f32 %v824_v31, %v823_v21  ;;  %v3018_v11 = vld [vmem:[#allocation22_spill] sm:$0xff]  ;;  %v3024_v21 = vld [vmem:[#allocation35_spill] sm:$0xff] }
 0x18d   :  { %v631_v14 = vrot.slane %v630_v57, 4  ;;  %v827_v20 = vadd.f32 %v826_v2, %v825_v35  ;;  %v3016_v2 = vld [vmem:[#allocation20_spill] sm:$0xff]  ;;  %v3017_v35 = vld [vmem:[#allocation23_spill] sm:$0xff] }
 0x18f   :  { %v632_v43 = vadd.f32 %v631_v14, %v630_v57  ;;  %v828_v47 = vrot.slane %v827_v20, 4 }
 0x191   :  { %v633_v29 = vrot.slane %v632_v43, 2  ;;  %v829_v40 = vadd.f32 %v828_v47, %v827_v20  ;;  %v3025_v47 = vld [vmem:[#allocation36_spill] sm:$0xff] }
 0x193   :  { %v634_v51 = vadd.f32 %v633_v29, %v632_v43  ;;  %v830_v46 = vrot.slane %v829_v40, 2  ;;  %v3013_v29 = vld [vmem:[#allocation17_spill] sm:$0xff] }
 0x195   :  { %v635_v60 = vrot.slane %v634_v51, 1  ;;  %v831_v5 = vadd.f32 %v830_v46, %v829_v40  ;;  %v3023_v40 = vld [vmem:[#allocation34_spill] sm:$0xff] }
 0x197   :  { %v636_v50 = vadd.f32 %v635_v60, %v634_v51  ;;  %v832_v38 = vrot.slane %v831_v5, 1  ;;  %v2250_v60 = vshrl.u32 %v986_v17, 7  ;;  %v3001_v17 = vld [vmem:[#allocation5_spill] sm:$0xff] }
 0x199   :  { %1423 = vmatmul.mubr.msk.f32.vlgmr.msra.gmra.mrb[28].mxu1 %vm503_vm0, %v636_v50  ;;  %v833_v14 = vadd.f32 %v832_v38, %v831_v5  ;;  %v3005_v38 = vld [vmem:[#allocation9_spill] sm:$0xff]  ;;  %v3022_v51 = vsub.s32 0, %v2250_v60 }
 0x19a   :  { %1476 = vmatpush3.bf16.msra.mxu1 %v1626_v27  ;;  %1433 = vmatprep.mubr.msk.f32.mxu1 %vm1532_vm1, %v2998_v3  ;;  %v2958_v27 = vsub.s32 0, %v2250_v60  ;;  %v3021_v3 = vld [vmem:[#allocation33_spill] sm:$0xff] }
 0x19b   :  { %1477 = vmatprep.subr.bf16.mxu1 %v2999_v55  ;;  %v3004_v55 = vld [vmem:[#allocation10_spill] sm:$0xff] }
 0x19e   :  { %1479 = vmatpush3.bf16.msra.mxu1 %v1636_v30  ;;  %v3019_v30 = vld [vmem:[#allocation24_spill] sm:$0xff] }
 0x1a1   :  { %1434 = vmatmul.mubr.msk.f32.vlgmr.msra.gmra.mrb[30].mxu1 %vm503_vm0, %v833_v14  ;;  %v3006_v14 = vld [vmem:[#allocation12_spill] sm:$0xff] }
 0x26c   :  { %v907_v20 = vpop.f32.mrb[28].mxu1 }
 0x26d   :  { %v1424_v23 = vpop.f32.mrb[29].mxu1  ;;  %v2255_v31 = vrot.slane %v907_v20, %v2958_v27  ;;  %v984_v0 = vmul.f32 %v907_v20, %v907_v20  ;;  %v3000_v20 = vld [vmem:[#allocation6_spill] sm:$0xff]  ;;  %v3020_v27 = vld [vmem:[#allocation32_spill] sm:$0xff] }
 0x26e   :  { %v3007_v23 = vld [vmem:[#allocation11_spill] sm:$0xff] }
 0x26f   :  { %v1050_v7 = vsub.f32 %v3023_v40, %v2255_v31  ;;  %v3026_v4 = vsub.f32 %v1653_v37, %v2255_v31  ;;  %v3029_v52 = vsub.f32 %v1666_v44, %v2255_v31  ;;  %v3030_v37 = vsub.f32 %v1692_v63, %v2255_v31 }
 0x270   :  { %v3033_v44 = vsub.f32 %v1704_v10, %v2255_v31  ;;  %v3034_v63 = vsub.f32 %v1732_v39, %v2255_v31  ;;  %v3037_v10 = vsub.f32 %v1744_v54, %v2255_v31  ;;  %v3039_v54 = vsub.f32 %v1764_v13, %v2255_v31 }
 0x274   :  { %v980_v46 = vpop.f32.mrb[30].mxu1 }
 0x275   :  { %v1435_v50 = vpop.f32.mrb[31].mxu1  ;;  %v985_v57 = vsub.f32 %v980_v46, %v984_v0  ;;  %v3008_v46 = vld [vmem:[#allocation14_spill] sm:$0xff]  ;;  %v3015_v0 = vld [vmem:[#allocation21_spill] sm:$0xff] }
 0x276   :  { %v3002_v50 = vld [vmem:[#allocation8_spill] sm:$0xff] }
 0x277   :  { %v1054_v5 = vadd.f32 1e-05, %v985_v57  ;;  %v3003_v57 = vld [vmem:[#allocation7_spill] sm:$0xff]  ;;  %v3042_v13 = vsub.f32 %v3002_v50, %v2255_v31  ;;  %v3047_v50 = vsub.f32 %v3007_v23, %v2255_v31 }
 0x279   :  { %1502 = vrsqrt.f32 %v1054_v5  ;;  %v3009_v5 = vld [vmem:[#allocation13_spill] sm:$0xff] }
 0x283   :  { %v1503_v32 = vpop.eup %1502 }
 0x284   :  { %v2379_v42 = vrot.slane %v1503_v32, %v3022_v51  ;;  %v3027_v32 = vsub.f32 %v1648_v34, %v2255_v31  ;;  %v3028_v51 = vsub.f32 %v1673_v49, %v2255_v31  ;;  %v3031_v34 = vsub.f32 %v1684_v58, %v2255_v31 }
 0x285   :  { %v3032_v49 = vsub.f32 %v1712_v15, %v2255_v31  ;;  %v3035_v58 = vsub.f32 %v1724_v28, %v2255_v31  ;;  %v3036_v15 = vsub.f32 %v1752_v62, %v2255_v31  ;;  %v3038_v28 = vsub.f32 %v1772_v19, %v2255_v31 }
 0x286   :  { %v1060_v48 = vmul.f32 %v2379_v42, %v3026_v4  ;;  %v1061_v60 = vmul.f32 %v2379_v42, %v3027_v32  ;;  %v1062_v53 = vmul.f32 %v2379_v42, %v3028_v51  ;;  %v1063_v43 = vmul.f32 %v2379_v42, %v3029_v52 }
 0x287   :  { %v1064_v4 = vmul.f32 %v2379_v42, %v3030_v37  ;;  %v1065_v32 = vmul.f32 %v2379_v42, %v3031_v34  ;;  %v1066_v51 = vmul.f32 %v2379_v42, %v3032_v49  ;;  %v1067_v52 = vmul.f32 %v2379_v42, %v3033_v44 }
 0x288   :  { %v1068_v37 = vmul.f32 %v2379_v42, %v3034_v63  ;;  %v1069_v34 = vmul.f32 %v2379_v42, %v3035_v58  ;;  %v1070_v49 = vmul.f32 %v2379_v42, %v3036_v15  ;;  %v1071_v44 = vmul.f32 %v2379_v42, %v3037_v10  ;;  %1124 = vst.msk [vmem:[%s2905_s4] sm:$0xff] %vm503_vm0, %v1060_v48  ;;  %v3054_v10 = vld [vmem:[#allocation18_spill] sm:$0xff] }
 0x289   :  { %1125 = vst.msk [vmem:[%s2905_s4 + $0x8] sm:$0xff] %vm503_vm0, %v1061_v60  ;;  %1126 = vst.msk [vmem:[%s2905_s4 + $0x10] sm:$0xff] %vm503_vm0, %v1062_v53  ;;  %v1072_v39 = vmul.f32 %v2379_v42, %v3038_v28  ;;  %v1073_v62 = vmul.f32 %v2379_v42, %v3039_v54  ;;  %v3040_v48 = vsub.f32 %v3000_v20, %v2255_v31 }
 0x28a   :  { %1127 = vst.msk [vmem:[%s2905_s4 + $0x18] sm:$0xff] %vm503_vm0, %v1063_v43  ;;  %v3041_v60 = vsub.f32 %v3001_v17, %v2255_v31  ;;  %1128 = vst.msk [vmem:[%s2905_s4 + $0x20] sm:$0xff] %vm503_vm0, %v1064_v4  ;;  %v1076_v19 = vmul.f32 %v2379_v42, %v3042_v13  ;;  %v3043_v20 = vsub.f32 %v3003_v57, %v2255_v31 }
 0x28b   :  { %v1074_v53 = vmul.f32 %v2379_v42, %v3040_v48  ;;  %1129 = vst.msk [vmem:[%s2905_s4 + $0x28] sm:$0xff] %vm503_vm0, %v1065_v32  ;;  %1130 = vst.msk [vmem:[%s2905_s4 + $0x30] sm:$0xff] %vm503_vm0, %v1066_v51  ;;  %v3044_v4 = vsub.f32 %v3004_v55, %v2255_v31  ;;  %v3045_v51 = vsub.f32 %v3005_v38, %v2255_v31  ;;  %v3058_v48 = vld [vmem:[#allocation19_spill] sm:$0xff] }
 0x28c   :  { %v1075_v43 = vmul.f32 %v2379_v42, %v3041_v60  ;;  %1131 = vst.msk [vmem:[%s2905_s4 + $0x38] sm:$0xff] %vm503_vm0, %v1067_v52  ;;  %v1077_v17 = vmul.f32 %v2379_v42, %v3043_v20  ;;  %1132 = vst.msk [vmem:[%s2905_s4 + $0x40] sm:$0xff] %vm503_vm0, %v1068_v37  ;;  %v3046_v55 = vsub.f32 %v3006_v14, %v2255_v31  ;;  %v3050_v14 = vld [vmem:[#allocation16_spill] sm:$0xff] }
 0x28d   :  { %v1078_v32 = vmul.f32 %v2379_v42, %v3044_v4  ;;  %v1079_v52 = vmul.f32 %v2379_v42, %v3045_v51  ;;  %1133 = vst.msk [vmem:[%s2905_s4 + $0x48] sm:$0xff] %vm503_vm0, %v1069_v34  ;;  %1134 = vst.msk [vmem:[%s2905_s4 + $0x50] sm:$0xff] %vm503_vm0, %v1070_v49  ;;  %v1081_v57 = vmul.f32 %v2379_v42, %v3047_v50 }
 0x28e   :  { %1135 = vst.msk [vmem:[%s2905_s4 + $0x58] sm:$0xff] %vm503_vm0, %v1071_v44  ;;  %v1080_v38 = vmul.f32 %v2379_v42, %v3046_v55  ;;  %v3048_v63 = vsub.f32 %v3008_v46, %v2255_v31  ;;  %v3049_v58 = vsub.f32 %v3009_v5, %v2255_v31  ;;  %1136 = vst.msk [vmem:[%s2905_s4 + $0x60] sm:$0xff] %vm503_vm0, %v1072_v39  ;;  %v3052_v5 = vld [vmem:[#allocation15_spill] sm:$0xff] }
 0x28f   :  { %1137 = vst.msk [vmem:[%s2905_s4 + $0x68] sm:$0xff] %vm503_vm0, %v1073_v62  ;;  %1138 = vst.msk [vmem:[%s2905_s4 + $0x70] sm:$0xff] %vm503_vm0, %v1074_v53  ;;  %v3051_v23 = vsub.f32 %v3050_v14, %v2255_v31  ;;  %v3053_v15 = vsub.f32 %v3052_v5, %v2255_v31  ;;  %v3055_v44 = vsub.f32 %v3054_v10, %v2255_v31 }
 0x290   :  { %v1082_v37 = vmul.f32 %v2379_v42, %v3048_v63  ;;  %v1083_v34 = vmul.f32 %v2379_v42, %v3049_v58  ;;  %1139 = vst.msk [vmem:[%s2905_s4 + $0x78] sm:$0xff] %vm503_vm0, %v1075_v43  ;;  %v3056_v39 = vsub.f32 %v3013_v29, %v2255_v31  ;;  %1140 = vst.msk [vmem:[%s2905_s4 + $0x80] sm:$0xff] %vm503_vm0, %v1076_v19 }
 0x291   :  { %v1084_v46 = vmul.f32 %v2379_v42, %v3051_v23  ;;  %v1085_v49 = vmul.f32 %v2379_v42, %v3053_v15  ;;  %v1086_v28 = vmul.f32 %v2379_v42, %v3055_v44  ;;  %1141 = vst.msk [vmem:[%s2905_s4 + $0x88] sm:$0xff] %vm503_vm0, %v1077_v17  ;;  %1142 = vst.msk [vmem:[%s2905_s4 + $0x90] sm:$0xff] %vm503_vm0, %v1078_v32 }
 0x292   :  { %v1087_v54 = vmul.f32 %v2379_v42, %v3056_v39  ;;  %1143 = vst.msk [vmem:[%s2905_s4 + $0x98] sm:$0xff] %vm503_vm0, %v1079_v52  ;;  %v3057_v29 = vsub.f32 %v1928_v56, %v2255_v31  ;;  %v3059_v53 = vsub.f32 %v3058_v48, %v2255_v31  ;;  %v3060_v43 = vsub.f32 %v3015_v0, %v2255_v31 }
 0x293   :  { %v3061_v19 = vsub.f32 %v3016_v2, %v2255_v31  ;;  %1144 = vst.msk [vmem:[%s2905_s4 + $0xa0] sm:$0xff] %vm503_vm0, %v1080_v38  ;;  %1145 = vst.msk [vmem:[%s2905_s4 + $0xa8] sm:$0xff] %vm503_vm0, %v1081_v57  ;;  %v3062_v56 = vsub.f32 %v3017_v35, %v2255_v31  ;;  %v3063_v0 = vsub.f32 %v3018_v11, %v2255_v31 }
 0x294   :  { %v1088_v62 = vmul.f32 %v2379_v42, %v3057_v29  ;;  %v1089_v60 = vmul.f32 %v2379_v42, %v3059_v53  ;;  %v1090_v13 = vmul.f32 %v2379_v42, %v3060_v43  ;;  %1146 = vst.msk [vmem:[%s2905_s4 + $0xb0] sm:$0xff] %vm503_vm0, %v1082_v37  ;;  %1147 = vst.msk [vmem:[%s2905_s4 + $0xb8] sm:$0xff] %vm503_vm0, %v1083_v34  ;;  %v3086_v29 = vld [vmem:[#allocation28_spill] sm:$0xff]  ;;  %v3088_v53 = vld [vmem:[#allocation29_spill] sm:$0xff] }
 0x295   :  { %v1091_v20 = vmul.f32 %v2379_v42, %v3061_v19  ;;  %v1092_v2 = vmul.f32 %v2379_v42, %v3062_v56  ;;  %v1093_v17 = vmul.f32 %v2379_v42, %v3063_v0  ;;  %v3064_v4 = vsub.f32 %v1980_v9, %v2255_v31  ;;  %1148 = vst.msk [vmem:[%s2905_s4 + $0xc0] sm:$0xff] %vm503_vm0, %v1084_v46  ;;  %v3092_v56 = vld [vmem:[#allocation31_spill] sm:$0xff] }
 0x296   :  { %v3065_v51 = vsub.f32 %v1974_v41, %v2255_v31  ;;  %1149 = vst.msk [vmem:[%s2905_s4 + $0xc8] sm:$0xff] %vm503_vm0, %v1085_v49  ;;  %1150 = vst.msk [vmem:[%s2905_s4 + $0xd0] sm:$0xff] %vm503_vm0, %v1086_v28  ;;  %v3066_v41 = vsub.f32 %v3019_v30, %v2255_v31  ;;  %v3067_v11 = vsub.f32 %v1984_v18, %v2255_v31  ;;  %v3082_v28 = vld [vmem:[#allocation26_spill] sm:$0xff] }
 0x297   :  { %v1094_v32 = vmul.f32 %v2379_v42, %v3064_v4  ;;  %1151 = vst.msk [vmem:[%s2905_s4 + $0xd8] sm:$0xff] %vm503_vm0, %v1087_v54  ;;  %v3068_v55 = vsub.f32 %v1990_v6, %v2255_v31  ;;  %v3069_v50 = vsub.f32 %v2006_v25, %v2255_v31  ;;  %1152 = vst.msk [vmem:[%s2905_s4 + $0xe0] sm:$0xff] %vm503_vm0, %v1088_v62 }
 0x298   :  { %v1095_v52 = vmul.f32 %v2379_v42, %v3065_v51  ;;  %v1096_v9 = vmul.f32 %v2379_v42, %v3066_v41  ;;  %v1097_v35 = vmul.f32 %v2379_v42, %v3067_v11  ;;  %1153 = vst.msk [vmem:[%s2905_s4 + $0xe8] sm:$0xff] %vm503_vm0, %v1089_v60  ;;  %1154 = vst.msk [vmem:[%s2905_s4 + $0xf0] sm:$0xff] %vm503_vm0, %v1090_v13  ;;  %v3090_v13 = vld [vmem:[#allocation30_spill] sm:$0xff] }
 0x299   :  { %v1098_v38 = vmul.f32 %v2379_v42, %v3068_v55  ;;  %v1099_v57 = vmul.f32 %v2379_v42, %v3069_v50  ;;  %1155 = vst.msk [vmem:[%s2905_s4 + $0xf8] sm:$0xff] %vm503_vm0, %v1091_v20  ;;  %v3070_v18 = vsub.f32 %v2010_v24, %v2255_v31  ;;  %v3071_v25 = vsub.f32 %v2026_v22, %v2255_v31 }
 0x29a   :  { %v3072_v63 = vsub.f32 %v2034_v36, %v2255_v31  ;;  %v3073_v58 = vsub.f32 %v2046_v12, %v2255_v31  ;;  %1156 = vst.msk [vmem:[%s2905_s4 + $0x100] sm:$0xff] %vm503_vm0, %v1092_v2  ;;  %1157 = vst.msk [vmem:[%s2905_s4 + $0x108] sm:$0xff] %vm503_vm0, %v1093_v17  ;;  %v3074_v24 = vsub.f32 %v2052_v45, %v2255_v31  ;;  %v3075_v36 = vld [vmem:[#allocation25_spill] sm:$0xff] }
 0x29b   :  { %v1100_v6 = vmul.f32 %v2379_v42, %v3070_v18  ;;  %v1101_v30 = vmul.f32 %v2379_v42, %v3071_v25  ;;  %1158 = vst.msk [vmem:[%s2905_s4 + $0x110] sm:$0xff] %vm503_vm0, %v1094_v32  ;;  %1159 = vst.msk [vmem:[%s2905_s4 + $0x118] sm:$0xff] %vm503_vm0, %v1095_v52  ;;  %v3076_v12 = vsub.f32 %v3075_v36, %v2255_v31 }
 0x29c   :  { %v1102_v37 = vmul.f32 %v2379_v42, %v3072_v63  ;;  %v1103_v34 = vmul.f32 %v2379_v42, %v3073_v58  ;;  %v1104_v22 = vmul.f32 %v2379_v42, %v3074_v24  ;;  %v3077_v23 = vsub.f32 %v2072_v33, %v2255_v31  ;;  %1160 = vst.msk [vmem:[%s2905_s4 + $0x120] sm:$0xff] %vm503_vm0, %v1096_v9 }
 0x29d   :  { %v1105_v14 = vmul.f32 %v2379_v42, %v3076_v12  ;;  %v3078_v5 = vsub.f32 %v2082_v61, %v2255_v31  ;;  %1161 = vst.msk [vmem:[%s2905_s4 + $0x128] sm:$0xff] %vm503_vm0, %v1097_v35  ;;  %1162 = vst.msk [vmem:[%s2905_s4 + $0x130] sm:$0xff] %vm503_vm0, %v1098_v38  ;;  %v3079_v45 = vsub.f32 %v2090_v59, %v2255_v31  ;;  %v3084_v59 = vld [vmem:[#allocation27_spill] sm:$0xff] }
 0x29e   :  { %v1106_v46 = vmul.f32 %v2379_v42, %v3077_v23  ;;  %1163 = vst.msk [vmem:[%s2905_s4 + $0x138] sm:$0xff] %vm503_vm0, %v1099_v57  ;;  %v3080_v61 = vsub.f32 %v2102_v16, %v2255_v31  ;;  %v3081_v10 = vsub.f32 %v2108_v26, %v2255_v31  ;;  %v3083_v39 = vsub.f32 %v3082_v28, %v2255_v31 }
 0x29f   :  { %v1107_v15 = vmul.f32 %v2379_v42, %v3078_v5  ;;  %v1108_v33 = vmul.f32 %v2379_v42, %v3079_v45  ;;  %1164 = vst.msk [vmem:[%s2905_s4 + $0x140] sm:$0xff] %vm503_vm0, %v1100_v6  ;;  %1165 = vst.msk [vmem:[%s2905_s4 + $0x148] sm:$0xff] %vm503_vm0, %v1101_v30  ;;  %v3085_v16 = vsub.f32 %v3084_v59, %v2255_v31 }
 0x2a0   :  { %v1109_v49 = vmul.f32 %v2379_v42, %v3080_v61  ;;  %v1110_v44 = vmul.f32 %v2379_v42, %v3081_v10  ;;  %v1111_v54 = vmul.f32 %v2379_v42, %v3083_v39  ;;  %1166 = vst.msk [vmem:[%s2905_s4 + $0x150] sm:$0xff] %vm503_vm0, %v1102_v37  ;;  %1167 = vst.msk [vmem:[%s2905_s4 + $0x158] sm:$0xff] %vm503_vm0, %v1103_v34 }
 0x2a1   :  { %v1112_v26 = vmul.f32 %v2379_v42, %v3085_v16  ;;  %v3087_v62 = vsub.f32 %v3086_v29, %v2255_v31  ;;  %v3089_v60 = vsub.f32 %v3088_v53, %v2255_v31  ;;  %v3091_v19 = vsub.f32 %v3090_v13, %v2255_v31  ;;  %1168 = vst.msk [vmem:[%s2905_s4 + $0x160] sm:$0xff] %vm503_vm0, %v1104_v22 }
 0x2a2   :  { %1169 = vst.msk [vmem:[%s2905_s4 + $0x168] sm:$0xff] %vm503_vm0, %v1105_v14  ;;  %1170 = vst.msk [vmem:[%s2905_s4 + $0x170] sm:$0xff] %vm503_vm0, %v1106_v46  ;;  %v3093_v2 = vsub.f32 %v3092_v56, %v2255_v31  ;;  %v3094_v17 = vsub.f32 %v2171_v8, %v2255_v31  ;;  %v3095_v32 = vsub.f32 %v3020_v27, %v2255_v31 }
 0x2a3   :  { %v1113_v48 = vmul.f32 %v2379_v42, %v3087_v62  ;;  %v1114_v43 = vmul.f32 %v2379_v42, %v3089_v60  ;;  %v1115_v20 = vmul.f32 %v2379_v42, %v3091_v19  ;;  %1171 = vst.msk [vmem:[%s2905_s4 + $0x178] sm:$0xff] %vm503_vm0, %v1107_v15  ;;  %v3096_v52 = vsub.f32 %v3021_v3, %v2255_v31 }
 0x2a4   :  { %v1116_v0 = vmul.f32 %v2379_v42, %v3093_v2  ;;  %v1117_v4 = vmul.f32 %v2379_v42, %v3094_v17  ;;  %v1118_v51 = vmul.f32 %v2379_v42, %v3095_v32  ;;  %1172 = vst.msk [vmem:[%s2905_s4 + $0x180] sm:$0xff] %vm503_vm0, %v1108_v33  ;;  %1173 = vst.msk [vmem:[%s2905_s4 + $0x188] sm:$0xff] %vm503_vm0, %v1109_v49 }
 0x2a5   :  { %v1119_v41 = vmul.f32 %v2379_v42, %v3096_v52  ;;  %1174 = vst.msk [vmem:[%s2905_s4 + $0x190] sm:$0xff] %vm503_vm0, %v1110_v44  ;;  %1175 = vst.msk [vmem:[%s2905_s4 + $0x198] sm:$0xff] %vm503_vm0, %v1111_v54  ;;  %v1120_v8 = vmul.f32 %v2379_v42, %v1050_v7  ;;  %v3097_v27 = vsub.f32 %v3024_v21, %v2255_v31 }
 0x2a6   :  { %v3098_v9 = vsub.f32 %v3025_v47, %v2255_v31  ;;  %v3099_v35 = vsub.f32 %v2228_v1, %v2255_v31  ;;  %1176 = vst.msk [vmem:[%s2905_s4 + $0x1a0] sm:$0xff] %vm503_vm0, %v1112_v26  ;;  %1177 = vst.msk [vmem:[%s2905_s4 + $0x1a8] sm:$0xff] %vm503_vm0, %v1113_v48 }
 0x2a7   :  { %v1121_v3 = vmul.f32 %v2379_v42, %v3097_v27  ;;  %1178 = vst.msk [vmem:[%s2905_s4 + $0x1b0] sm:$0xff] %vm503_vm0, %v1114_v43  ;;  %1179 = vst.msk [vmem:[%s2905_s4 + $0x1b8] sm:$0xff] %vm503_vm0, %v1115_v20 }
 0x2a8   :  { %v1122_v11 = vmul.f32 %v2379_v42, %v3098_v9  ;;  %v1123_v55 = vmul.f32 %v2379_v42, %v3099_v35  ;;  %1180 = vst.msk [vmem:[%s2905_s4 + $0x1c0] sm:$0xff] %vm503_vm0, %v1116_v0  ;;  %1181 = vst.msk [vmem:[%s2905_s4 + $0x1c8] sm:$0xff] %vm503_vm0, %v1117_v4 }
 0x2a9   :  { %1182 = vst.msk [vmem:[%s2905_s4 + $0x1d0] sm:$0xff] %vm503_vm0, %v1118_v51  ;;  %1183 = vst.msk [vmem:[%s2905_s4 + $0x1d8] sm:$0xff] %vm503_vm0, %v1119_v41 }
 0x2aa   :  { %1184 = vst.msk [vmem:[%s2905_s4 + $0x1e0] sm:$0xff] %vm503_vm0, %v1120_v8  ;;  %1185 = vst.msk [vmem:[%s2905_s4 + $0x1e8] sm:$0xff] %vm503_vm0, %v1121_v3 }
 0x2ab   :  { %1186 = vst.msk [vmem:[%s2905_s4 + $0x1f0] sm:$0xff] %vm503_vm0, %v1122_v11  ;;  %1187 = vst.msk [vmem:[%s2905_s4 + $0x1f8] sm:$0xff] %vm503_vm0, %v1123_v55 }
 0x2ac   :  { %1192 = vsyncpa [#allocation3], 1 }

</bundles_post_ra>
